<compile_context>
chip_gen: v7x
topology: tpu7x:2x2x1
jax: 0.10.0
libtpu: 0.0.40
codegen_flags: <defaults>
</compile_context>

<pallas_src>
import functools

import jax
import jax.numpy as jnp
from jax.experimental import pallas as pl
from jax.experimental.pallas import tpu as pltpu


def _round_up(x, m):
    return ((x + m - 1) // m) * m


def _pick_tile(M, tile_m=None):
    """Row tile: >=128 (MXU/vreg utilization), generation-aware grid splitting."""
    if tile_m is None:
        tile_m = 1024
    m128 = _round_up(M, 128)
    kind = ""
    try:
        kind = (getattr(jax.devices()[0], "device_kind", "") or "").lower()
    except Exception:
        pass
    if "v7" in kind and m128 >= 256:
        # 2 TensorCores per chip: give the "parallel" M axis >= 2 grid steps.
        tm = min(tile_m, _round_up(m128 // 2, 128))
    else:
        # Single TensorCore (v5e/v6e): fewer, fatter steps (each step ~0.35us).
        tm = min(tile_m, m128)
    m_pad = _round_up(M, tm)
    return tm, m_pad


def _mlp_kernel(x_ref, w_ref, b_ref, wo_ref, bo_ref, o_ref, *, depth, alpha):
    # x_ref : (TM, width)            f32   -- raw input rows for this tile
    # w_ref : (depth, width, width)  bf16  -- torch (out,in) layout, VMEM-resident
    # b_ref : (depth, width, 1)      f32   -- VMEM-resident
    # wo_ref: (1, width)             bf16  -- output-layer weight row (MXU path)
    # bo_ref: (1, 1)                 f32   -- output-layer bias, SMEM scalar
    # o_ref : (1, TM)                f32   -- lane-dense sigmoid outputs
    #
    # In-kernel cast + transpose (XLU slot, idle during the layer matmuls):
    # rows land on lanes, features on sublanes.
    h = jnp.transpose(x_ref[...]).astype(jnp.bfloat16)      # (width, TM) bf16
    for d in range(depth):                                  # static, unrolled
        z = jnp.dot(w_ref[d], h, preferred_element_type=jnp.float32)   # MXU
        z = z + b_ref[d]                                    # (width,1) broadcast, f32
        z = jnp.maximum(z, alpha * z)                       # leaky_relu (0<alpha<1)
        h = z.astype(jnp.bfloat16)                          # bf16 feed for next MXU
    # width -> 1 projection on the MXU; (1, TM) result is lane-dense.
    y = jnp.dot(wo_ref[...], h, preferred_element_type=jnp.float32)    # (1, TM)
    y = y + bo_ref[0, 0]
    y = jnp.maximum(y, alpha * y)                           # leaky_relu on out layer
    o_ref[...] = jax.nn.sigmoid(y)


def net_forward(x, weights, biases, wout_row, bout, *, alpha, tile_m=None):
    """Pallas equivalent of Net.forward for NCHW input x with H*W == width."""
    B, C, H, W = x.shape
    width = H * W
    depth, w_out, w_in = weights.shape
    assert w_out == width and w_in == width, "Linear(width, width) needs H*W == width"
    M = B * C

    tm, m_pad = _pick_tile(M, tile_m)

    # VMEM residency guard: weights/biases are kept fully resident (and
    # double-buffered by the pipeline).  At width=256/depth=3 this is <1 MiB;
    # flag before it approaches the v5e scoped default.
    resident_bytes = 2 * (weights.size * 2 + biases.size * 4 + wout_row.size * 2)
    stream_bytes = 2 * (tm * width * 4 + tm * 4)
    assert resident_bytes + stream_bytes < 12 * 1024 * 1024, (
        "weight block too large to keep VMEM-resident; add K-tiling over width"
    )  # TODO(synk): K-tiled ('arbitrary' axis + f32 accumulator) path for big width

    x2 = x.reshape(M, width)                 # metadata-only view, no HBM pass
    if m_pad != M:
        x2 = jnp.pad(x2, ((0, m_pad - M), (0, 0)))

    kernel = functools.partial(_mlp_kernel, depth=depth, alpha=alpha)
    cost = pl.CostEstimate(
        flops=m_pad * (2 * depth * width * width + 2 * width),
        transcendentals=m_pad,
        bytes_accessed=(m_pad * width * 4 + weights.size * 2 + biases.size * 4
                        + wout_row.size * 2 + m_pad * 4),
    )
    out = pl.pallas_call(
        kernel,
        out_shape=jax.ShapeDtypeStruct((1, m_pad), jnp.float32),
        grid=(m_pad // tm,),
        in_specs=[
            pl.BlockSpec((tm, width), lambda i: (i, 0)),               # x rows
            pl.BlockSpec((depth, width, width), lambda i: (0, 0, 0)),  # resident W
            pl.BlockSpec((depth, width, 1), lambda i: (0, 0, 0)),      # resident b
            pl.BlockSpec((1, width), lambda i: (0, 0)),                # resident w_out
            pl.BlockSpec(memory_space=pltpu.MemorySpace.SMEM),         # scalar b_out
        ],
        out_specs=pl.BlockSpec((1, tm), lambda i: (0, i)),             # lane-dense
        compiler_params=pltpu.CompilerParams(
            dimension_semantics=("parallel",),
        ),
        cost_estimate=cost,
    )(x2, weights, biases, wout_row, bout)

    out = out[0, :M]                         # drop row padding
    # torch.squeeze(self.outSig(x)) on shape (B, C, 1)
    return jnp.squeeze(out.reshape(B, C))


def init_params(key, depth, width, init_variance):
    """Parameter init mirroring Net.__init__ (torch layouts, TPU-friendly dtypes)."""
    keys = jax.random.split(key, 2 * depth + 2)
    bound = 1.0 / (width ** 0.5)             # PyTorch Linear default bias/out init
    std = float(init_variance) ** 0.5

    ws, bs = [], []
    for d in range(depth):
        w = jax.random.normal(keys[2 * d], (width, width), jnp.float32) * std
        b = jax.random.uniform(keys[2 * d + 1], (width,), jnp.float32, -bound, bound)
        ws.append(w)                          # torch weight shape (out, in)
        bs.append(b.reshape(width, 1))
    weights = jnp.stack(ws, 0).astype(jnp.bfloat16)   # (depth, width, width) bf16
    biases = jnp.stack(bs, 0)                         # (depth, width, 1) f32

    wout = jax.random.uniform(keys[-2], (1, width), jnp.float32, -bound, bound)
    bout = jax.random.uniform(keys[-1], (1,), jnp.float32, -bound, bound)
    wout_row = wout.astype(jnp.bfloat16)              # (1, width) bf16 (MXU path)
    bout = bout.reshape(1, 1)                         # (1, 1) f32 (SMEM scalar)
    return weights, biases, wout_row, bout


if __name__ == "__main__":
    depth = 3
    alpha = 0.01
    width = 256                  # H*W must equal width (Linear(width, width))
    init_variance = 2.0 / width
    B, C, H, W = 2, 4, 16, 16    # M = B*C = 8 rows (padded to one 128-row tile)

    key = jax.random.PRNGKey(0)
    kx, kp = jax.random.split(key)
    x = jax.random.normal(kx, (B, C, H, W), jnp.float32)
    weights, biases, wout_row, bout = init_params(kp, depth, width, init_variance)

    fwd = jax.jit(
        lambda x, w, b, wr, bo: net_forward(x, w, b, wr, bo, alpha=alpha)
    )
    out = jax.block_until_ready(fwd(x, weights, biases, wout_row, bout))

    # Pure-JAX reference of the same math (identical bf16 quantization points).
    # NOTE: bf16 weights/activations deviate ~O(1e-2) relative from the f32
    # torch model; acceptable for this forward pass.
    def ref(x):
        M = B * C
        h = x.reshape(M, width).astype(jnp.bfloat16)
        for d in range(depth):
            z = jnp.dot(h, weights[d].T, preferred_element_type=jnp.float32)
            z = z + biases[d][:, 0]
            z = jnp.maximum(z, alpha * z)
            h = z.astype(jnp.bfloat16)
        y = jnp.dot(h, wout_row[0], preferred_element_type=jnp.float32)
        y = y + bout[0, 0]
        y = jnp.maximum(y, alpha * y)
        return jnp.squeeze(jax.nn.sigmoid(y).reshape(B, C))

    expected = ref(x)
    assert out.shape == expected.shape, (out.shape, expected.shape)
    assert jnp.allclose(out, expected, atol=2e-3, rtol=2e-3), float(
        jnp.max(jnp.abs(out - expected))
    )
    print("KERNEL_OK")
</pallas_src>

<mosaic_0001>
module attributes {stable_mosaic.version = 11 : i64} {
  func.func @_mlp_kernel(%arg0: i32, %arg1: memref<128x256xf32, #tpu.memory_space<vmem>>, %arg2: memref<3x256x256xbf16, #tpu.memory_space<vmem>>, %arg3: memref<3x256x1xf32, #tpu.memory_space<vmem>>, %arg4: memref<1x256xbf16, #tpu.memory_space<vmem>>, %arg5: memref<1x1xf32, #tpu.memory_space<smem>>, %arg6: memref<1x128xf32, #tpu.memory_space<vmem>>) attributes {dimension_semantics = [#tpu.dimension_semantics<parallel>], iteration_bounds = array<i64: 1>, scalar_prefetch = 0 : i64, scratch_operands = 0 : i64, tpu.core_type = #tpu.core_type<tc>, window_params = [{transform_indices = @transform_0, window_bounds = array<i64: 128, 256>}, {pipeline_mode = #tpu.pipeline_mode<synchronous>, transform_indices = @transform_1, window_bounds = array<i64: 3, 256, 256>}, {pipeline_mode = #tpu.pipeline_mode<synchronous>, transform_indices = @transform_2, window_bounds = array<i64: 3, 256, 1>}, {pipeline_mode = #tpu.pipeline_mode<synchronous>, transform_indices = @transform_3, window_bounds = array<i64: 1, 256>}, {transform_indices = @transform_4, window_bounds = array<i64: 1, 1>}, {transform_indices = @transform_5, window_bounds = array<i64: 1, 128>}]} {
    %c0 = arith.constant 0 : index
    %c0_0 = arith.constant 0 : index
    %0 = vector.load %arg1[%c0, %c0_0] : memref<128x256xf32, #tpu.memory_space<vmem>>, vector<128x256xf32>
    %1 = tpu.transpose %0, [1, 0] : vector<128x256xf32> -> vector<256x128xf32>
    %2 = arith.truncf %1 : vector<256x128xf32> to vector<256x128xbf16>
    %c0_1 = arith.constant 0 : index
    %c0_2 = arith.constant 0 : index
    %c0_3 = arith.constant 0 : index
    %3 = vector.load %arg2[%c0_1, %c0_2, %c0_3] : memref<3x256x256xbf16, #tpu.memory_space<vmem>>, vector<1x256x256xbf16>
    %4 = vector.shape_cast %3 : vector<1x256x256xbf16> to vector<256x256xbf16>
    %cst = arith.constant dense<0.000000e+00> : vector<256x128xf32>
    %5 = tpu.matmul %4, %2, %cst {dimension_numbers = #tpu.dot_dimension_numbers<[1], [0], [0], [1], [0, 0, 1, 1], [], []>} : vector<256x256xbf16>, vector<256x128xbf16>, vector<256x128xf32> -> vector<256x128xf32>
    %c0_4 = arith.constant 0 : index
    %c0_5 = arith.constant 0 : index
    %c0_6 = arith.constant 0 : index
    %6 = vector.load %arg3[%c0_4, %c0_5, %c0_6] : memref<3x256x1xf32, #tpu.memory_space<vmem>>, vector<1x256x1xf32>
    %7 = vector.shape_cast %6 : vector<1x256x1xf32> to vector<256x1xf32>
    %8 = vector.broadcast %7 : vector<256x1xf32> to vector<256x128xf32>
    %9 = arith.addf %5, %8 : vector<256x128xf32>
    %cst_7 = arith.constant 0.00999999977 : f32
    %10 = vector.broadcast %cst_7 : f32 to vector<256x128xf32>
    %11 = arith.mulf %10, %9 : vector<256x128xf32>
    %12 = arith.maximumf %9, %11 : vector<256x128xf32>
    %13 = arith.truncf %12 : vector<256x128xf32> to vector<256x128xbf16>
    %c1 = arith.constant 1 : index
    %c0_8 = arith.constant 0 : index
    %c0_9 = arith.constant 0 : index
    %14 = vector.load %arg2[%c1, %c0_8, %c0_9] : memref<3x256x256xbf16, #tpu.memory_space<vmem>>, vector<1x256x256xbf16>
    %15 = vector.shape_cast %14 : vector<1x256x256xbf16> to vector<256x256xbf16>
    %cst_10 = arith.constant dense<0.000000e+00> : vector<256x128xf32>
    %16 = tpu.matmul %15, %13, %cst_10 {dimension_numbers = #tpu.dot_dimension_numbers<[1], [0], [0], [1], [0, 0, 1, 1], [], []>} : vector<256x256xbf16>, vector<256x128xbf16>, vector<256x128xf32> -> vector<256x128xf32>
    %c1_11 = arith.constant 1 : index
    %c0_12 = arith.constant 0 : index
    %c0_13 = arith.constant 0 : index
    %17 = vector.load %arg3[%c1_11, %c0_12, %c0_13] : memref<3x256x1xf32, #tpu.memory_space<vmem>>, vector<1x256x1xf32>
    %18 = vector.shape_cast %17 : vector<1x256x1xf32> to vector<256x1xf32>
    %19 = vector.broadcast %18 : vector<256x1xf32> to vector<256x128xf32>
    %20 = arith.addf %16, %19 : vector<256x128xf32>
    %cst_14 = arith.constant 0.00999999977 : f32
    %21 = vector.broadcast %cst_14 : f32 to vector<256x128xf32>
    %22 = arith.mulf %21, %20 : vector<256x128xf32>
    %23 = arith.maximumf %20, %22 : vector<256x128xf32>
    %24 = arith.truncf %23 : vector<256x128xf32> to vector<256x128xbf16>
    %c2 = arith.constant 2 : index
    %c0_15 = arith.constant 0 : index
    %c0_16 = arith.constant 0 : index
    %25 = vector.load %arg2[%c2, %c0_15, %c0_16] : memref<3x256x256xbf16, #tpu.memory_space<vmem>>, vector<1x256x256xbf16>
    %26 = vector.shape_cast %25 : vector<1x256x256xbf16> to vector<256x256xbf16>
    %cst_17 = arith.constant dense<0.000000e+00> : vector<256x128xf32>
    %27 = tpu.matmul %26, %24, %cst_17 {dimension_numbers = #tpu.dot_dimension_numbers<[1], [0], [0], [1], [0, 0, 1, 1], [], []>} : vector<256x256xbf16>, vector<256x128xbf16>, vector<256x128xf32> -> vector<256x128xf32>
    %c2_18 = arith.constant 2 : index
    %c0_19 = arith.constant 0 : index
    %c0_20 = arith.constant 0 : index
    %28 = vector.load %arg3[%c2_18, %c0_19, %c0_20] : memref<3x256x1xf32, #tpu.memory_space<vmem>>, vector<1x256x1xf32>
    %29 = vector.shape_cast %28 : vector<1x256x1xf32> to vector<256x1xf32>
    %30 = vector.broadcast %29 : vector<256x1xf32> to vector<256x128xf32>
    %31 = arith.addf %27, %30 : vector<256x128xf32>
    %cst_21 = arith.constant 0.00999999977 : f32
    %32 = vector.broadcast %cst_21 : f32 to vector<256x128xf32>
    %33 = arith.mulf %32, %31 : vector<256x128xf32>
    %34 = arith.maximumf %31, %33 : vector<256x128xf32>
    %35 = arith.truncf %34 : vector<256x128xf32> to vector<256x128xbf16>
    %c0_22 = arith.constant 0 : index
    %c0_23 = arith.constant 0 : index
    %36 = vector.load %arg4[%c0_22, %c0_23] : memref<1x256xbf16, #tpu.memory_space<vmem>>, vector<1x256xbf16>
    %cst_24 = arith.constant dense<0.000000e+00> : vector<1x128xf32>
    %37 = tpu.matmul %36, %35, %cst_24 {dimension_numbers = #tpu.dot_dimension_numbers<[1], [0], [0], [1], [0, 0, 1, 1], [], []>} : vector<1x256xbf16>, vector<256x128xbf16>, vector<1x128xf32> -> vector<1x128xf32>
    %c0_25 = arith.constant 0 : index
    %c0_26 = arith.constant 0 : index
    %38 = memref.load %arg5[%c0_25, %c0_26] : memref<1x1xf32, #tpu.memory_space<smem>>
    %39 = vector.broadcast %38 : f32 to vector<1x128xf32>
    %40 = arith.addf %37, %39 : vector<1x128xf32>
    %cst_27 = arith.constant 0.00999999977 : f32
    %41 = vector.broadcast %cst_27 : f32 to vector<1x128xf32>
    %42 = arith.mulf %41, %40 : vector<1x128xf32>
    %43 = arith.maximumf %40, %42 : vector<1x128xf32>
    %44 = arith.negf %43 : vector<1x128xf32>
    %45 = math.exp %44 : vector<1x128xf32>
    %cst_28 = arith.constant 1.000000e+00 : f32
    %46 = vector.broadcast %cst_28 : f32 to vector<1x128xf32>
    %47 = arith.addf %46, %45 : vector<1x128xf32>
    %48 = arith.divf %46, %47 : vector<1x128xf32>
    %c0_29 = arith.constant 0 : index
    %c0_30 = arith.constant 0 : index
    %49 = vector.load %arg6[%c0_29, %c0_30] : memref<1x128xf32, #tpu.memory_space<vmem>>, vector<1x128xf32>
    tpu.vector_store %arg6[%c0_29, %c0_30], %48 {strides = array<i32>} : memref<1x128xf32, #tpu.memory_space<vmem>>, vector<1x128xf32>,
    return
  }
  func.func @transform_0(%arg0: i32) -> (i32, i32) {
    %c0_i32 = arith.constant 0 : i32
    %c0_i32_0 = arith.constant 0 : i32
    return %arg0, %c0_i32 : i32, i32
  }
  func.func @transform_1(%arg0: i32) -> (i32, i32, i32) {
    %c0_i32 = arith.constant 0 : i32
    %c0_i32_0 = arith.constant 0 : i32
    %c0_i32_1 = arith.constant 0 : i32
    %c0_i32_2 = arith.constant 0 : i32
    return %c0_i32, %c0_i32_0, %c0_i32_1 : i32, i32, i32
  }
  func.func @transform_2(%arg0: i32) -> (i32, i32, i32) {
    %c0_i32 = arith.constant 0 : i32
    %c0_i32_0 = arith.constant 0 : i32
    %c0_i32_1 = arith.constant 0 : i32
    %c0_i32_2 = arith.constant 0 : i32
    return %c0_i32, %c0_i32_0, %c0_i32_1 : i32, i32, i32
  }
  func.func @transform_3(%arg0: i32) -> (i32, i32) {
    %c0_i32 = arith.constant 0 : i32
    %c0_i32_0 = arith.constant 0 : i32
    %c0_i32_1 = arith.constant 0 : i32
    return %c0_i32, %c0_i32_0 : i32, i32
  }
  func.func @transform_4(%arg0: i32) -> (i32, i32) {
    %c0_i32 = arith.constant 0 : i32
    %c0_i32_0 = arith.constant 0 : i32
    %c0_i32_1 = arith.constant 0 : i32
    return %c0_i32, %c0_i32_0 : i32, i32
  }
  func.func @transform_5(%arg0: i32) -> (i32, i32) {
    %c0_i32 = arith.constant 0 : i32
    %c0_i32_0 = arith.constant 0 : i32
    return %c0_i32, %arg0 : i32, i32
  }
}

</mosaic_0001>

<bundles_post_ra>
// kernel: squeeze.1
= control target key start
LH: loop header
LB: loop body
LE: loop exit
PB: predicated region body
PF: predicated region fallthrough
CT: control target
= control target key end

     0   :  { %s85_s0 = inlined_call_operand.vmem [shape: f32[8], index: 0, kind: input, shape index: {}]   ;;  %s86_s1 = inlined_call_operand.hbm [shape: f32[2,4], index: 1, kind: output, shape index: {}]  }
   0x1   :  { %v5_v0 = vld [vmem:[%s85_s0] sm:$0x1] }
   0x2   :  { %2 = vsyncpa [#allocation1], 0  ;;  %6 = vst [vmem:[#allocation3] sm:$0x1] %v5_v0  ;;  %vm8_vm0 = vcmask 31744   ;;  %s58_s0 = smov 124  }
   0x3   :  { %s59_s8 = smov [#allocation0]  }
   0x4   :  { %s26_s9 = sshll.u32 %s59_s8, 4  ;;  %s27_s9 = int_to_ptr.vmem [resolvable:$true] %s26_s9 }
   0x5   :  { %s34_s10 = scalar_lea.vmem %s27_s9, 32  ;;  %p39_p1 = scmp.lt.s32.totalorder %s27_s9, %s27_s9 }
   0x6   :  { %p35_p0 = scmp.ne.s32.totalorder %s27_s9, %s34_s10  ;;  %p40_p2 = scmp.lt.s32.totalorder %s34_s10, %s34_s10 }
   0x8   :  { %p41_p3 = por %p40_p2, %p39_p1 }
   0x9   :  { %v10_v1 = vld [vmem:[#allocation3] sm:$0x1]  }
   0xa   :  { %v7_v2 = vld [vmem:[#allocation3] sm:$0x1]   ;;  %11 = vrot.lane.b32.xlu0 %v10_v1, %s58_s0  ;;  %p42_p4 = pnand %p41_p3, %p35_p0 }
   0xb   :  { %9 = vst.msk [vmem:[#allocation2] sm:$0x1] %vm8_vm0, %v7_v2  }
  0x7c   :  { %v12_v3 = vpop.permute.xlu0 %11  }
  0x7d   :  { %15 = vst.msk [vmem:[#allocation2 + $0x1] sm:$0x1] %vm8_vm0, %v12_v3  }
  0x84   :  { %v19_v4 = vld [vmem:[#allocation2] sm:$0x3] }
  0x85   :  { %21 = vst [vmem:[#allocation0] sm:$0x3] %v19_v4 }
  0x86   :  { %45 = shalt.err (!%p42_p4)
}
  0x87   :  { %s46_s13 = scalar_lea.hbm %s86_s1, 32 }
  0x88   :  { %p47_p5 = scmp.ne.s32.totalorder %s86_s1, %s46_s13  ;;  %p50_p6 = scmp.lt.u32.totalorder %s46_s13, %s86_s1 }
  0x8a   :  { %p52_p7 = pnand %p50_p6, %p47_p5 }
  0x8c   :  { %55 = shalt.err (!%p52_p7)
}
  0x8d   :  { %29 = dma.vmem_to_hbm [thread:$0]  %s27_s9, 32, %s86_s1, [#allocation1]  }
  0x8e   :  { %56 = dma.done.wait [#allocation1], 32  }
  0x8f   :  { %57 = vsyncadd [#allocation1], 4294967264 }
  0x90   :  { %31 = vsyncpa [#allocation1], 1 }

// kernel: _lambda_.1
= control target key start
LH: loop header
LB: loop body
LE: loop exit
PB: predicated region body
PF: predicated region fallthrough
CT: control target
= control target key end

     0   :  { %v2958_v3 = vmov 0   ;;  %s3931_s0 = inlined_call_operand.vmem [shape: f32[128,256], index: 0, kind: input, shape index: {}]   ;;  %s3932_s2 = inlined_call_operand.vmem [shape: f32[3,256,1], index: 2, kind: input, shape index: {}]   ;;  %s3933_s1 = inlined_call_operand.vmem [shape: bf16[3,256,256], index: 1, kind: input, shape index: {}]   ;;  %s3934_s3 = inlined_call_operand.vmem [shape: bf16[1,256], index: 3, kind: input, shape index: {}]   ;;  %s3935_s4 = inlined_call_operand.<no memory space> [shape: f32[1,1], index: 4, kind: input, shape index: {}]   ;;  %s3936_s5 = inlined_call_operand.vmem [shape: f32[1,128], index: 5, kind: output, shape index: {}]  }
   0x1   :  { %v22_v0 = vld [vmem:[%s3931_s0] sm:$0xff]  ;;  %v23_v1 = vld [vmem:[%s3931_s0 + $0x8] sm:$0xff]  ;;  %v24_v2 = vld [vmem:[%s3931_s0 + $0x10] sm:$0xff]  ;;  %2808 = vset.pattern.permute.xlu1 %v2958_v3 }
   0x2   :  { %v2696_v4 = vpack.i.bf16 %v22_v0, %v23_v1  ;;  %v25_v5 = vld [vmem:[%s3931_s0 + $0x18] sm:$0xff]  ;;  %v26_v7 = vld [vmem:[%s3931_s0 + $0x20] sm:$0xff]  ;;  %v27_v8 = vld [vmem:[%s3931_s0 + $0x28] sm:$0xff] }
   0x3   :  { %v2698_v6 = vpack.i.bf16 %v24_v2, %v25_v5  ;;  %v182_v9 = vld [vmem:[%s3932_s2 + $0x80] sm:$0xff]  ;;  %v183_v10 = vld [vmem:[%s3932_s2 + $0x88] sm:$0xff]  ;;  %v2700_v11 = vpack.i.bf16 %v26_v7, %v27_v8  ;;  %v28_v12 = vld [vmem:[%s3931_s0 + $0x30] sm:$0xff] }
   0x4   :  { %2697 = vxpose.xlu0.b32.start [1/16] %v2696_v4, 128  ;;  %280 = vperm.xlu1 %2808, %v182_v9   ;;  %v29_v13 = vld [vmem:[%s3931_s0 + $0x38] sm:$0xff]  ;;  %v166_v14 = vld [vmem:[%s3932_s2] sm:$0xff]  ;;  %v31_v17 = vld [vmem:[%s3931_s0 + $0x48] sm:$0xff] }
   0x5   :  { %v2702_v15 = vpack.i.bf16 %v28_v12, %v29_v13  ;;  %v30_v16 = vld [vmem:[%s3931_s0 + $0x40] sm:$0xff]  ;;  %v167_v18 = vld [vmem:[%s3932_s2 + $0x8] sm:$0xff]  ;;  %v32_v20 = vld [vmem:[%s3931_s0 + $0x50] sm:$0xff] }
   0x6   :  { %v2704_v19 = vpack.i.bf16 %v30_v16, %v31_v17  ;;  %v33_v21 = vld [vmem:[%s3931_s0 + $0x58] sm:$0xff]  ;;  %v184_v22 = vld [vmem:[%s3932_s2 + $0x90] sm:$0xff]  ;;  %v34_v24 = vld [vmem:[%s3931_s0 + $0x60] sm:$0xff] }
   0x7   :  { %v2706_v23 = vpack.i.bf16 %v32_v20, %v33_v21  ;;  %v35_v25 = vld [vmem:[%s3931_s0 + $0x68] sm:$0xff]  ;;  %v185_v26 = vld [vmem:[%s3932_s2 + $0x98] sm:$0xff]  ;;  %v36_v28 = vld [vmem:[%s3931_s0 + $0x70] sm:$0xff] }
   0x8   :  { %2699 = vxpose.xlu0.b32.cont [2/16] %v2698_v6, 128  ;;  %285 = vperm.xlu1 %2808, %v183_v10   ;;  %v2708_v27 = vpack.i.bf16 %v34_v24, %v35_v25  ;;  %v37_v29 = vld [vmem:[%s3931_s0 + $0x78] sm:$0xff]  ;;  %v168_v30 = vld [vmem:[%s3932_s2 + $0x10] sm:$0xff]  ;;  %v38_v32 = vld [vmem:[%s3931_s0 + $0x80] sm:$0xff] }
   0x9   :  { %v2710_v31 = vpack.i.bf16 %v36_v28, %v37_v29  ;;  %v39_v33 = vld [vmem:[%s3931_s0 + $0x88] sm:$0xff]  ;;  %v169_v34 = vld [vmem:[%s3932_s2 + $0x18] sm:$0xff]  ;;  %v40_v36 = vld [vmem:[%s3931_s0 + $0x90] sm:$0xff] }
   0xa   :  { %v2712_v35 = vpack.i.bf16 %v38_v32, %v39_v33  ;;  %v41_v37 = vld [vmem:[%s3931_s0 + $0x98] sm:$0xff]  ;;  %v186_v38 = vld [vmem:[%s3932_s2 + $0xa0] sm:$0xff]  ;;  %v43_v41 = vld [vmem:[%s3931_s0 + $0xa8] sm:$0xff] }
   0xb   :  { %v2714_v39 = vpack.i.bf16 %v40_v36, %v41_v37  ;;  %v42_v40 = vld [vmem:[%s3931_s0 + $0xa0] sm:$0xff]  ;;  %v187_v42 = vld [vmem:[%s3932_s2 + $0xa8] sm:$0xff]  ;;  %v44_v44 = vld [vmem:[%s3931_s0 + $0xb0] sm:$0xff] }
   0xc   :  { %2701 = vxpose.xlu0.b32.cont [3/16] %v2700_v11, 128  ;;  %200 = vperm.xlu1 %2808, %v166_v14   ;;  %v2716_v43 = vpack.i.bf16 %v42_v40, %v43_v41  ;;  %v45_v45 = vld [vmem:[%s3931_s0 + $0xb8] sm:$0xff]  ;;  %v170_v46 = vld [vmem:[%s3932_s2 + $0x20] sm:$0xff]  ;;  %v47_v49 = vld [vmem:[%s3931_s0 + $0xc8] sm:$0xff] }
   0xd   :  { %v2718_v47 = vpack.i.bf16 %v44_v44, %v45_v45  ;;  %v46_v48 = vld [vmem:[%s3931_s0 + $0xc0] sm:$0xff]  ;;  %v171_v50 = vld [vmem:[%s3932_s2 + $0x28] sm:$0xff]  ;;  %v48_v52 = vld [vmem:[%s3931_s0 + $0xd0] sm:$0xff] }
   0xe   :  { %v2720_v51 = vpack.i.bf16 %v46_v48, %v47_v49  ;;  %v49_v53 = vld [vmem:[%s3931_s0 + $0xd8] sm:$0xff]  ;;  %v188_v54 = vld [vmem:[%s3932_s2 + $0xb0] sm:$0xff]  ;;  %v50_v56 = vld [vmem:[%s3931_s0 + $0xe0] sm:$0xff] }
   0xf   :  { %v2722_v55 = vpack.i.bf16 %v48_v52, %v49_v53  ;;  %v51_v57 = vld [vmem:[%s3931_s0 + $0xe8] sm:$0xff]  ;;  %v189_v58 = vld [vmem:[%s3932_s2 + $0xb8] sm:$0xff]  ;;  %v52_v60 = vld [vmem:[%s3931_s0 + $0xf0] sm:$0xff] }
  0x10   :  { %2703 = vxpose.xlu0.b32.cont [4/16] %v2702_v15, 128  ;;  %205 = vperm.xlu1 %2808, %v167_v18   ;;  %v2724_v59 = vpack.i.bf16 %v50_v56, %v51_v57  ;;  %v53_v61 = vld [vmem:[%s3931_s0 + $0xf8] sm:$0xff]  ;;  %v172_v62 = vld [vmem:[%s3932_s2 + $0x30] sm:$0xff]  ;;  %v191_v1 = vld [vmem:[%s3932_s2 + $0xc8] sm:$0xff] }
  0x11   :  { %v2726_v63 = vpack.i.bf16 %v52_v60, %v53_v61  ;;  %v173_v0 = vld [vmem:[%s3932_s2 + $0x38] sm:$0xff]  ;;  %v174_v2 = vld [vmem:[%s3932_s2 + $0x40] sm:$0xff]  ;;  %v175_v6 = vld [vmem:[%s3932_s2 + $0x48] sm:$0xff] }
  0x12   :  { %v2812_v4 = vld [vmem:[%s3933_s1 + $0x4] ss:$8 sps:$4 sm:$0xff]   ;;  %v2815_v5 = vld [vmem:[%s3933_s1 + $0x94] ss:$8 sps:$4 sm:$0xff]  }
  0x13   :  { %550 = vmatprep.mubr.bf16.mxu0 %v2812_v4  ;;  %622 = vmatprep.mubr.bf16.mxu1 %v2815_v5  ;;  %v192_v7 = vld [vmem:[%s3932_s2 + $0xd0] sm:$0xff]  ;;  %v193_v8 = vld [vmem:[%s3932_s2 + $0xd8] sm:$0xff]  ;;  %v194_v11 = vld [vmem:[%s3932_s2 + $0xe0] sm:$0xff] }
  0x14   :  { %2705 = vxpose.xlu0.b32.cont [5/16] %v2704_v19, 128  ;;  %290 = vperm.xlu1 %2808, %v184_v22   ;;  %v176_v9 = vld [vmem:[%s3932_s2 + $0x50] sm:$0xff]  ;;  %v177_v10 = vld [vmem:[%s3932_s2 + $0x58] sm:$0xff]  ;;  %v195_v12 = vld [vmem:[%s3932_s2 + $0xe8] sm:$0xff] }
  0x15   :  { %v178_v13 = vld [vmem:[%s3932_s2 + $0x60] sm:$0xff]  ;;  %v179_v15 = vld [vmem:[%s3932_s2 + $0x68] sm:$0xff]  ;;  %v196_v16 = vld [vmem:[%s3932_s2 + $0xf0] sm:$0xff] }
  0x16   :  { %v190_v14 = vld [vmem:[%s3932_s2 + $0xc0] sm:$0xff]  ;;  %v180_v17 = vld [vmem:[%s3932_s2 + $0x70] sm:$0xff]  ;;  %v181_v18 = vld [vmem:[%s3932_s2 + $0x78] sm:$0xff] }
  0x17   :  { %v2174_v19 = vld [vmem:[%s3932_s2 + $0x180] sm:$0xff]  ;;  %v2175_v20 = vld [vmem:[%s3932_s2 + $0x188] sm:$0xff]  ;;  %v2177_v24 = vld [vmem:[%s3932_s2 + $0x198] sm:$0xff] }
  0x18   :  { %2707 = vxpose.xlu0.b32.cont [6/16] %v2706_v23, 128  ;;  %295 = vperm.xlu1 %2808, %v185_v26   ;;  %v2158_v21 = vld [vmem:[%s3932_s2 + $0x100] sm:$0xff]  ;;  %v2159_v22 = vld [vmem:[%s3932_s2 + $0x108] sm:$0xff]  ;;  %v2176_v23 = vld [vmem:[%s3932_s2 + $0x190] sm:$0xff] }
  0x19   :  { %v2160_v25 = vld [vmem:[%s3932_s2 + $0x110] sm:$0xff]  ;;  %v2161_v26 = vld [vmem:[%s3932_s2 + $0x118] sm:$0xff]  ;;  %v2179_v29 = vld [vmem:[%s3932_s2 + $0x1a8] sm:$0xff] }
  0x1a   :  { %v2180_v40 = vld [vmem:[%s3932_s2 + $0x1b0] sm:$0xff]  ;;  %v2181_v44 = vld [vmem:[%s3932_s2 + $0x1b8] sm:$0xff]  ;;  %v2182_v52 = vld [vmem:[%s3932_s2 + $0x1c0] sm:$0xff] }
  0x1b   :  { %v2164_v45 = vld [vmem:[%s3932_s2 + $0x130] sm:$0xff]  ;;  %v2183_v56 = vld [vmem:[%s3932_s2 + $0x1c8] sm:$0xff]  ;;  %v2166_v57 = vld [vmem:[%s3932_s2 + $0x140] sm:$0xff] }
  0x1c   :  { %2709 = vxpose.xlu0.b32.cont [7/16] %v2708_v27, 128  ;;  %210 = vperm.xlu1 %2808, %v168_v30   ;;  %v2178_v27 = vld [vmem:[%s3932_s2 + $0x1a0] sm:$0xff]  ;;  %v2185_v5 = vld [vmem:[%s3932_s2 + $0x1d8] sm:$0xff] }
  0x20   :  { %2711 = vxpose.xlu0.b32.cont [8/16] %v2710_v31, 128  ;;  %215 = vperm.xlu1 %2808, %v169_v34  }
  0x24   :  { %2713 = vxpose.xlu0.b32.cont [9/16] %v2712_v35, 128  ;;  %300 = vperm.xlu1 %2808, %v186_v38   ;;  %v2162_v35 = vld [vmem:[%s3932_s2 + $0x120] sm:$0xff] }
  0x28   :  { %2715 = vxpose.xlu0.b32.cont [10/16] %v2714_v39, 128  ;;  %305 = vperm.xlu1 %2808, %v187_v42   ;;  %v2163_v39 = vld [vmem:[%s3932_s2 + $0x128] sm:$0xff] }
  0x2c   :  { %2717 = vxpose.xlu0.b32.cont [11/16] %v2716_v43, 128  ;;  %220 = vperm.xlu1 %2808, %v170_v46  }
  0x30   :  { %2719 = vxpose.xlu0.b32.cont [12/16] %v2718_v47, 128  ;;  %225 = vperm.xlu1 %2808, %v171_v50  }
  0x34   :  { %2721 = vxpose.xlu0.b32.cont [13/16] %v2720_v51, 128  ;;  %310 = vperm.xlu1 %2808, %v188_v54   ;;  %v2165_v51 = vld [vmem:[%s3932_s2 + $0x138] sm:$0xff] }
  0x38   :  { %2723 = vxpose.xlu0.b32.cont [14/16] %v2722_v55, 128  ;;  %315 = vperm.xlu1 %2808, %v189_v58  }
  0x3c   :  { %2725 = vxpose.xlu0.b32.cont [15/16] %v2724_v59, 128  ;;  %230 = vperm.xlu1 %2808, %v172_v62  }
  0x40   :  { %2727 = vxpose.xlu0.b32.end [16/16] %v2726_v63, 128  ;;  %235 = vperm.xlu1 %2808, %v173_v0   ;;  %v2167_v63 = vld [vmem:[%s3932_s2 + $0x148] sm:$0xff]  ;;  %v2184_v0 = vld [vmem:[%s3932_s2 + $0x1d0] sm:$0xff] }
  0x44   :  { %325 = vperm.xlu1 %2808, %v191_v1  }
  0x48   :  { %240 = vperm.xlu1 %2808, %v174_v2  }
  0x4c   :  { %245 = vperm.xlu1 %2808, %v175_v6   ;;  %v2168_v6 = vld [vmem:[%s3932_s2 + $0x150] sm:$0xff] }
  0x50   :  { %330 = vperm.xlu1 %2808, %v192_v7  }
  0x54   :  { %335 = vperm.xlu1 %2808, %v193_v8  }
  0x58   :  { %250 = vperm.xlu1 %2808, %v176_v9  }
  0x5c   :  { %255 = vperm.xlu1 %2808, %v177_v10  }
  0x60   :  { %340 = vperm.xlu1 %2808, %v194_v11  }
  0x64   :  { %345 = vperm.xlu1 %2808, %v195_v12   ;;  %v2169_v12 = vld [vmem:[%s3932_s2 + $0x158] sm:$0xff] }
  0x68   :  { %260 = vperm.xlu1 %2808, %v178_v13   ;;  %v2186_v13 = vld [vmem:[%s3932_s2 + $0x1e0] sm:$0xff] }
  0x69   :  { %2809 = vset.pattern.permute.xlu0 %v2958_v3  ;;  %v197_v3 = vld [vmem:[%s3932_s2 + $0xf8] sm:$0xff] }
  0x6a   :  { %320 = vperm.xlu0 %2809, %v190_v14  }
  0x6c   :  { %265 = vperm.xlu1 %2808, %v179_v15  }
  0x6e   :  { %350 = vperm.xlu0 %2809, %v196_v16  }
  0x70   :  { %355 = vperm.xlu1 %2808, %v197_v3   ;;  %v2187_v3 = vld [vmem:[%s3932_s2 + $0x1e8] sm:$0xff] }
  0x72   :  { %270 = vperm.xlu0 %2809, %v180_v17   ;;  %v2170_v17 = vld [vmem:[%s3932_s2 + $0x160] sm:$0xff] }
  0x74   :  { %275 = vperm.xlu1 %2808, %v181_v18  }
  0x76   :  { %907 = vperm.xlu0 %2809, %v2174_v19  }
  0x78   :  { %912 = vperm.xlu1 %2808, %v2175_v20  }
  0x7a   :  { %827 = vperm.xlu0 %2809, %v2158_v21  }
  0x7c   :  { %832 = vperm.xlu1 %2808, %v2159_v22  }
  0x7e   :  { %917 = vperm.xlu0 %2809, %v2176_v23   ;;  %v2171_v23 = vld [vmem:[%s3932_s2 + $0x168] sm:$0xff] }
  0x80   :  { %922 = vperm.xlu1 %2808, %v2177_v24   ;;  %v2188_v24 = vld [vmem:[%s3932_s2 + $0x1f0] sm:$0xff] }
  0x82   :  { %837 = vperm.xlu0 %2809, %v2160_v25  }
  0x84   :  { %v2728_v28 = vpop.trf.xlu0  ;;  %842 = vperm.xlu1 %2808, %v2161_v26  }
  0x85   :  { %v2729_v31 = vunpack.i.l.bf16 %v2728_v28  ;;  %v2732_v32 = vunpack.i.h.bf16 %v2728_v28  ;;  %v2189_v28 = vld [vmem:[%s3932_s2 + $0x1f8] sm:$0xff] }
  0x86   :  { %927 = vperm.xlu0 %2809, %v2178_v27  }
  0x88   :  { %v2733_v30 = vpop.trf.xlu0  ;;  %932 = vperm.xlu1 %2808, %v2179_v29   ;;  %v2172_v29 = vld [vmem:[%s3932_s2 + $0x170] sm:$0xff] }
  0x89   :  { %v2734_v33 = vunpack.i.l.bf16 %v2733_v30  ;;  %v2737_v34 = vunpack.i.h.bf16 %v2733_v30 }
  0x8a   :  { %847 = vperm.xlu0 %2809, %v2162_v35   ;;  %v2173_v35 = vld [vmem:[%s3932_s2 + $0x178] sm:$0xff] }
  0x8b   :  { %v126_v36 = vpack.c.bf16 %v2734_v33, %v2729_v31  ;;  %v118_v37 = vpack.c.bf16 %v2737_v34, %v2732_v32 }
  0x8c   :  { %v2738_v38 = vpop.trf.xlu0  ;;  %852 = vperm.xlu1 %2808, %v2163_v39  }
  0x8d   :  { %2320 = vmatprep.subr.bf16.mxu0 %v126_v36  ;;  %2678 = vmatprep.subr.bf16.mxu1 %v126_v36  ;;  %v2742_v41 = vunpack.i.h.bf16 %v2738_v38  ;;  %v2739_v42 = vunpack.i.l.bf16 %v2738_v38  ;;  %v2270_v36 = vld [vmem:[%s3932_s2 + $0x280] sm:$0xff] }
  0x8e   :  { %2321 = vmatpush3.bf16.msra.mxu0 %v118_v37  ;;  %2686 = vmatpush3.bf16.msra.mxu1 %v118_v37  ;;  %v3289_v37 = vpop.permute.xlu1 %280 }
  0x8f   :  { %937 = vperm.xlu0 %2809, %v2180_v40  }
  0x90   :  { %v2743_v43 = vpop.trf.xlu0  ;;  %942 = vperm.xlu1 %2808, %v2181_v44  }
  0x91   :  { %v2747_v46 = vunpack.i.h.bf16 %v2743_v43  ;;  %v2744_v47 = vunpack.i.l.bf16 %v2743_v43 }
  0x93   :  { %v127_v48 = vpack.c.bf16 %v2744_v47, %v2739_v42  ;;  %v119_v49 = vpack.c.bf16 %v2747_v46, %v2742_v41  ;;  %857 = vperm.xlu0 %2809, %v2164_v45   ;;  %v2271_v41 = vld [vmem:[%s3932_s2 + $0x288] sm:$0xff]  ;;  %v2254_v42 = vld [vmem:[%s3932_s2 + $0x200] sm:$0xff]  ;;  %v3297_v45 = vpop.permute.xlu1 %285 }
  0x94   :  { %v2748_v50 = vpop.trf.xlu0  ;;  %862 = vperm.xlu1 %2808, %v2165_v51  }
  0x95   :  { %2322 = vmatprep.subr.bf16.mxu0 %v127_v48  ;;  %2679 = vmatprep.subr.bf16.mxu1 %v127_v48  ;;  %v2752_v53 = vunpack.i.h.bf16 %v2748_v50  ;;  %v2749_v54 = vunpack.i.l.bf16 %v2748_v50  ;;  %v2272_v50 = vld [vmem:[%s3932_s2 + $0x290] sm:$0xff] }
  0x96   :  { %2323 = vmatpush3.bf16.msra.mxu0 %v119_v49  ;;  %2687 = vmatpush3.bf16.msra.mxu1 %v119_v49  ;;  %v2255_v49 = vld [vmem:[%s3932_s2 + $0x208] sm:$0xff] }
  0x97   :  { %947 = vperm.xlu0 %2809, %v2182_v52  }
  0x98   :  { %v2753_v55 = vpop.trf.xlu0  ;;  %952 = vperm.xlu1 %2808, %v2183_v56   ;;  %v3311_v56 = vpop.permute.xlu1 %200 }
  0x99   :  { %v2757_v58 = vunpack.i.h.bf16 %v2753_v55  ;;  %v2754_v59 = vunpack.i.l.bf16 %v2753_v55  ;;  %v2256_v55 = vld [vmem:[%s3932_s2 + $0x210] sm:$0xff] }
  0x9b   :  { %v128_v60 = vpack.c.bf16 %v2754_v59, %v2749_v54  ;;  %v120_v61 = vpack.c.bf16 %v2757_v58, %v2752_v53  ;;  %867 = vperm.xlu0 %2809, %v2166_v57   ;;  %v2273_v54 = vld [vmem:[%s3932_s2 + $0x298] sm:$0xff] }
  0x9c   :  { %v2758_v62 = vpop.trf.xlu0  ;;  %872 = vperm.xlu1 %2808, %v2167_v63   ;;  %v2810_v63 = vld [vmem:[%s3933_s1] ss:$8 sps:$4 sm:$0xff]  }
  0x9d   :  { %2324 = vmatprep.subr.bf16.mxu0 %v128_v60  ;;  %2680 = vmatprep.subr.bf16.mxu1 %v128_v60  ;;  %v2762_v1 = vunpack.i.h.bf16 %v2758_v62  ;;  %v2759_v2 = vunpack.i.l.bf16 %v2758_v62  ;;  %v2274_v62 = vld [vmem:[%s3932_s2 + $0x2a0] sm:$0xff] }
  0x9e   :  { %2325 = vmatpush3.bf16.msra.mxu0 %v120_v61  ;;  %2688 = vmatpush3.bf16.msra.mxu1 %v120_v61  ;;  %v2257_v61 = vld [vmem:[%s3932_s2 + $0x218] sm:$0xff] }
  0x9f   :  { %957 = vperm.xlu0 %2809, %v2184_v0   ;;  %v2813_v0 = vld [vmem:[%s3933_s1 + $0x90] ss:$8 sps:$4 sm:$0xff]  }
  0xa0   :  { %v2763_v4 = vpop.trf.xlu0  ;;  %962 = vperm.xlu1 %2808, %v2185_v5   ;;  %v2275_v5 = vld [vmem:[%s3932_s2 + $0x2a8] sm:$0xff] }
  0xa1   :  { %v2767_v7 = vunpack.i.h.bf16 %v2763_v4  ;;  %v2764_v8 = vunpack.i.l.bf16 %v2763_v4  ;;  %v3331_v4 = vpop.permute.xlu1 %205 }
  0xa3   :  { %v129_v9 = vpack.c.bf16 %v2764_v8, %v2759_v2  ;;  %v121_v10 = vpack.c.bf16 %v2767_v7, %v2762_v1  ;;  %877 = vperm.xlu0 %2809, %v2168_v6   ;;  %v2816_v1 = vld [vmem:[%s3933_s1 + $0x14] ss:$8 sps:$4 sm:$0xff]   ;;  %v2818_v2 = vld [vmem:[%s3933_s1 + $0xa4] ss:$8 sps:$4 sm:$0xff]  }
  0xa4   :  { %v2768_v11 = vpop.trf.xlu0  ;;  %882 = vperm.xlu1 %2808, %v2169_v12   ;;  %v2258_v6 = vld [vmem:[%s3932_s2 + $0x220] sm:$0xff]  ;;  %v2259_v7 = vld [vmem:[%s3932_s2 + $0x228] sm:$0xff]  ;;  %v2276_v8 = vld [vmem:[%s3932_s2 + $0x2b0] sm:$0xff] }
  0xa5   :  { %2326 = vmatprep.subr.bf16.mxu0 %v129_v9  ;;  %2681 = vmatprep.subr.bf16.mxu1 %v129_v9  ;;  %v2772_v14 = vunpack.i.h.bf16 %v2768_v11  ;;  %v2769_v15 = vunpack.i.l.bf16 %v2768_v11  ;;  %v3345_v9 = vpop.permute.xlu1 %290  ;;  %v2821_v11 = vld [vmem:[%s3933_s1 + $0xa0] ss:$8 sps:$4 sm:$0xff]   ;;  %v2822_v12 = vld [vmem:[%s3933_s1 + $0x24] ss:$8 sps:$4 sm:$0xff]  }
  0xa6   :  { %2327 = vmatpush3.bf16.msra.mxu0 %v121_v10  ;;  %2689 = vmatpush3.bf16.msra.mxu1 %v121_v10  ;;  %v2820_v10 = vld [vmem:[%s3933_s1 + $0x10] ss:$8 sps:$4 sm:$0xff]  }
  0xa7   :  { %967 = vperm.xlu0 %2809, %v2186_v13   ;;  %v2824_v13 = vld [vmem:[%s3933_s1 + $0xb4] ss:$8 sps:$4 sm:$0xff]  }
  0xa8   :  { %v2773_v16 = vpop.trf.xlu0  ;;  %972 = vperm.xlu1 %2808, %v2187_v3   ;;  %v2261_v3 = vld [vmem:[%s3932_s2 + $0x238] sm:$0xff] }
  0xa9   :  { %v2777_v18 = vunpack.i.h.bf16 %v2773_v16  ;;  %v2774_v19 = vunpack.i.l.bf16 %v2773_v16  ;;  %v3365_v16 = vpop.permute.xlu1 %295 }
  0xab   :  { %v130_v20 = vpack.c.bf16 %v2774_v19, %v2769_v15  ;;  %v122_v21 = vpack.c.bf16 %v2777_v18, %v2772_v14  ;;  %887 = vperm.xlu0 %2809, %v2170_v17   ;;  %v2277_v14 = vld [vmem:[%s3932_s2 + $0x2b8] sm:$0xff]  ;;  %v2260_v15 = vld [vmem:[%s3932_s2 + $0x230] sm:$0xff]  ;;  %v2278_v17 = vld [vmem:[%s3932_s2 + $0x2c0] sm:$0xff] }
  0xac   :  { %v2778_v22 = vpop.trf.xlu0  ;;  %892 = vperm.xlu1 %2808, %v2171_v23   ;;  %v2826_v18 = vld [vmem:[%s3933_s1 + $0x20] ss:$8 sps:$4 sm:$0xff]   ;;  %v2827_v19 = vld [vmem:[%s3933_s1 + $0xb0] ss:$8 sps:$4 sm:$0xff]  }
  0xad   :  { %2328 = vmatprep.subr.bf16.mxu0 %v130_v20  ;;  %2682 = vmatprep.subr.bf16.mxu1 %v130_v20  ;;  %v2782_v25 = vunpack.i.h.bf16 %v2778_v22  ;;  %v2779_v26 = vunpack.i.l.bf16 %v2778_v22  ;;  %v2828_v20 = vld [vmem:[%s3933_s1 + $0x34] ss:$8 sps:$4 sm:$0xff]   ;;  %v2279_v22 = vld [vmem:[%s3932_s2 + $0x2c8] sm:$0xff]  ;;  %v2262_v23 = vld [vmem:[%s3932_s2 + $0x240] sm:$0xff] }
  0xae   :  { %2329 = vmatpush3.bf16.msra.mxu0 %v122_v21  ;;  %2690 = vmatpush3.bf16.msra.mxu1 %v122_v21  ;;  %v2830_v21 = vld [vmem:[%s3933_s1 + $0xc4] ss:$8 sps:$4 sm:$0xff]  }
  0xaf   :  { %977 = vperm.xlu0 %2809, %v2188_v24   ;;  %v3391_v24 = vpop.permute.xlu1 %210 }
  0xb0   :  { %v2783_v27 = vpop.trf.xlu0  ;;  %982 = vperm.xlu1 %2808, %v2189_v28   ;;  %v2833_v28 = vld [vmem:[%s3933_s1 + $0xc0] ss:$8 sps:$4 sm:$0xff]  }
  0xb1   :  { %v2787_v30 = vunpack.i.h.bf16 %v2783_v27  ;;  %v2784_v31 = vunpack.i.l.bf16 %v2783_v27  ;;  %v2832_v27 = vld [vmem:[%s3933_s1 + $0x30] ss:$8 sps:$4 sm:$0xff]  }
  0xb3   :  { %v131_v32 = vpack.c.bf16 %v2784_v31, %v2779_v26  ;;  %v123_v33 = vpack.c.bf16 %v2787_v30, %v2782_v25  ;;  %897 = vperm.xlu0 %2809, %v2172_v29   ;;  %v2263_v25 = vld [vmem:[%s3932_s2 + $0x248] sm:$0xff]  ;;  %v2280_v26 = vld [vmem:[%s3932_s2 + $0x2d0] sm:$0xff]  ;;  %v3411_v31 = vpop.permute.xlu1 %215 }
  0xb4   :  { %v2788_v34 = vpop.trf.xlu0  ;;  %902 = vperm.xlu1 %2808, %v2173_v35   ;;  %v2834_v29 = vld [vmem:[%s3933_s1 + $0x44] ss:$8 sps:$4 sm:$0xff]   ;;  %v2836_v30 = vld [vmem:[%s3933_s1 + $0xd4] ss:$8 sps:$4 sm:$0xff]  }
  0xb5   :  { %2330 = vmatprep.subr.bf16.mxu0 %v131_v32  ;;  %2683 = vmatprep.subr.bf16.mxu1 %v131_v32  ;;  %v2792_v38 = vunpack.i.h.bf16 %v2788_v34  ;;  %v2789_v39 = vunpack.i.l.bf16 %v2788_v34  ;;  %v2281_v32 = vld [vmem:[%s3932_s2 + $0x2d8] sm:$0xff]  ;;  %v2282_v35 = vld [vmem:[%s3932_s2 + $0x2e0] sm:$0xff] }
  0xb6   :  { %2331 = vmatpush3.bf16.msra.mxu0 %v123_v33  ;;  %2691 = vmatpush3.bf16.msra.mxu1 %v123_v33  ;;  %v2264_v33 = vld [vmem:[%s3932_s2 + $0x250] sm:$0xff]  ;;  %v2265_v34 = vld [vmem:[%s3932_s2 + $0x258] sm:$0xff] }
  0xb7   :  { %1534 = vperm.xlu0 %2809, %v2270_v36   ;;  %v3425_v36 = vpop.permute.xlu1 %300 }
  0xb8   :  { %v2793_v40 = vpop.trf.xlu0  ;;  %1539 = vperm.xlu1 %2808, %v2271_v41   ;;  %v2842_v41 = vld [vmem:[%s3933_s1 + $0xe4] ss:$8 sps:$4 sm:$0xff]  }
  0xb9   :  { %v2797_v43 = vunpack.i.h.bf16 %v2793_v40  ;;  %v2794_v44 = vunpack.i.l.bf16 %v2793_v40  ;;  %v2840_v40 = vld [vmem:[%s3933_s1 + $0x54] ss:$8 sps:$4 sm:$0xff]  }
  0xbb   :  { %v132_v46 = vpack.c.bf16 %v2794_v44, %v2789_v39  ;;  %v124_v47 = vpack.c.bf16 %v2797_v43, %v2792_v38  ;;  %1454 = vperm.xlu0 %2809, %v2254_v42   ;;  %v2838_v38 = vld [vmem:[%s3933_s1 + $0x40] ss:$8 sps:$4 sm:$0xff]   ;;  %v2839_v39 = vld [vmem:[%s3933_s1 + $0xd0] ss:$8 sps:$4 sm:$0xff]   ;;  %v3445_v44 = vpop.permute.xlu1 %305 }
  0xbc   :  { %v2798_v48 = vpop.trf.xlu0  ;;  %1459 = vperm.xlu1 %2808, %v2255_v49   ;;  %v2283_v42 = vld [vmem:[%s3932_s2 + $0x2e8] sm:$0xff]  ;;  %v2266_v43 = vld [vmem:[%s3932_s2 + $0x260] sm:$0xff] }
  0xbd   :  { %2332 = vmatprep.subr.bf16.mxu0 %v132_v46  ;;  %2684 = vmatprep.subr.bf16.mxu1 %v132_v46  ;;  %v2802_v51 = vunpack.i.h.bf16 %v2798_v48  ;;  %v2799_v52 = vunpack.i.l.bf16 %v2798_v48  ;;  %v2267_v46 = vld [vmem:[%s3932_s2 + $0x268] sm:$0xff]  ;;  %v2844_v48 = vld [vmem:[%s3933_s1 + $0x50] ss:$8 sps:$4 sm:$0xff]  }
  0xbe   :  { %2333 = vmatpush3.bf16.msra.mxu0 %v124_v47  ;;  %2692 = vmatpush3.bf16.msra.mxu1 %v124_v47  ;;  %v2284_v47 = vld [vmem:[%s3932_s2 + $0x2f0] sm:$0xff]  ;;  %v2845_v49 = vld [vmem:[%s3933_s1 + $0xe0] ss:$8 sps:$4 sm:$0xff]  }
  0xbf   :  { %1544 = vperm.xlu0 %2809, %v2272_v50   ;;  %v2846_v50 = vld [vmem:[%s3933_s1 + $0x64] ss:$8 sps:$4 sm:$0xff]  }
  0xc0   :  { %v2803_v53 = vpop.trf.xlu0  ;;  %1549 = vperm.xlu1 %2808, %v2273_v54   ;;  %v3471_v54 = vpop.permute.xlu1 %220 }
  0xc1   :  { %v2807_v57 = vunpack.i.h.bf16 %v2803_v53  ;;  %v2804_v58 = vunpack.i.l.bf16 %v2803_v53  ;;  %v2268_v53 = vld [vmem:[%s3932_s2 + $0x270] sm:$0xff] }
  0xc3   :  { %v133_v59 = vpack.c.bf16 %v2804_v58, %v2799_v52  ;;  %v125_v60 = vpack.c.bf16 %v2807_v57, %v2802_v51  ;;  %1464 = vperm.xlu0 %2809, %v2256_v55   ;;  %v2848_v51 = vld [vmem:[%s3933_s1 + $0xf4] ss:$8 sps:$4 sm:$0xff]   ;;  %v2850_v57 = vld [vmem:[%s3933_s1 + $0x60] ss:$8 sps:$4 sm:$0xff]   ;;  %v2851_v58 = vld [vmem:[%s3933_s1 + $0xf0] ss:$8 sps:$4 sm:$0xff]  }
  0xc4   :  { %1469 = vperm.xlu1 %2808, %v2257_v61   ;;  %v2285_v52 = vld [vmem:[%s3932_s2 + $0x2f8] sm:$0xff] }
  0xc5   :  { %2334 = vmatprep.subr.bf16.mxu0 %v133_v59  ;;  %2685 = vmatprep.subr.bf16.mxu1 %v133_v59  ;;  %v2269_v55 = vld [vmem:[%s3932_s2 + $0x278] sm:$0xff] }
  0xc6   :  { %2335 = vmatpush3.bf16.msra.mxu0 %v125_v60  ;;  %2693 = vmatpush3.bf16.msra.mxu1 %v125_v60  ;;  %v2852_v59 = vld [vmem:[%s3933_s1 + $0x74] ss:$8 sps:$4 sm:$0xff]   ;;  %v3485_v60 = vpop.permute.xlu1 %225  ;;  %v2854_v61 = vld [vmem:[%s3933_s1 + $0x70] ss:$8 sps:$4 sm:$0xff]  }
  0xc7   :  { %1554 = vperm.xlu0 %2809, %v2274_v62   ;;  %v2855_v62 = vld [vmem:[%s3933_s1 + $0x84] ss:$8 sps:$4 sm:$0xff]  }
  0xc8   :  { %1559 = vperm.xlu1 %2808, %v2275_v5  }
  0xc9   :  { %551 = vmatmul.mubr.bf16.vlgmr.msra.gmra.mrb[0].mxu0 %v2810_v63  ;;  %623 = vmatmul.mubr.bf16.vlgmr.msra.gmra.mrb[0].mxu1 %v2813_v0  ;;  %v2857_v63 = vld [vmem:[%s3933_s1 + $0x80] ss:$8 sps:$4 sm:$0xff]  }
  0xca   :  { %558 = vmatprep.mubr.bf16.mxu0 %v2816_v1  ;;  %630 = vmatprep.mubr.bf16.mxu1 %v2818_v2  ;;  %v3496_v0 = vpop.permute.xlu1 %310 }
  0xcb   :  { %1474 = vperm.xlu0 %2809, %v2258_v6  }
  0xcc   :  { %1479 = vperm.xlu1 %2808, %v2259_v7   ;;  %v2860_v7 = vld [vmem:[%s3933_s1 + $0x104] ss:$8 sps:$4 sm:$0xff]  }
  0xce   :  { %v3498_v1 = vpop.permute.xlu1 %315 }
  0xcf   :  { %1564 = vperm.xlu0 %2809, %v2276_v8  }
  0xd0   :  { %1569 = vperm.xlu1 %2808, %v2277_v14  }
  0xd1   :  { %559 = vmatmul.mubr.bf16.gmra.mrb[4].mxu0 %v2820_v10  ;;  %631 = vmatmul.mubr.bf16.gmra.mrb[4].mxu1 %v2821_v11 }
  0xd2   :  { %566 = vmatprep.mubr.bf16.mxu0 %v2822_v12  ;;  %638 = vmatprep.mubr.bf16.mxu1 %v2824_v13  ;;  %v3500_v2 = vpop.permute.xlu1 %230 }
  0xd3   :  { %1484 = vperm.xlu0 %2809, %v2260_v15  }
  0xd4   :  { %1489 = vperm.xlu1 %2808, %v2261_v3  }
  0xd6   :  { %v3502_v5 = vpop.permute.xlu1 %235 }
  0xd7   :  { %1574 = vperm.xlu0 %2809, %v2278_v17  }
  0xd8   :  { %1579 = vperm.xlu1 %2808, %v2279_v22  }
  0xd9   :  { %567 = vmatmul.mubr.bf16.gmra.mrb[8].mxu0 %v2826_v18  ;;  %639 = vmatmul.mubr.bf16.gmra.mrb[8].mxu1 %v2827_v19 }
  0xda   :  { %574 = vmatprep.mubr.bf16.mxu0 %v2828_v20  ;;  %646 = vmatprep.mubr.bf16.mxu1 %v2830_v21  ;;  %v3504_v6 = vpop.permute.xlu1 %325 }
  0xdb   :  { %1494 = vperm.xlu0 %2809, %v2262_v23  }
  0xdc   :  { %1499 = vperm.xlu1 %2808, %v2263_v25  }
  0xde   :  { %v3509_v8 = vpop.permute.xlu1 %240 }
  0xdf   :  { %1584 = vperm.xlu0 %2809, %v2280_v26  }
  0xe0   :  { %1589 = vperm.xlu1 %2808, %v2281_v32  }
  0xe1   :  { %575 = vmatmul.mubr.bf16.gmra.mrb[12].mxu0 %v2832_v27  ;;  %647 = vmatmul.mubr.bf16.gmra.mrb[12].mxu1 %v2833_v28 }
  0xe2   :  { %582 = vmatprep.mubr.bf16.mxu0 %v2834_v29  ;;  %654 = vmatprep.mubr.bf16.mxu1 %v2836_v30  ;;  %v3511_v10 = vpop.permute.xlu1 %245 }
  0xe3   :  { %1504 = vperm.xlu0 %2809, %v2264_v33  }
  0xe4   :  { %1509 = vperm.xlu1 %2808, %v2265_v34  }
  0xe6   :  { %v3513_v11 = vpop.permute.xlu1 %330 }
  0xe7   :  { %1594 = vperm.xlu0 %2809, %v2282_v35  }
  0xe8   :  { %1599 = vperm.xlu1 %2808, %v2283_v42  }
  0xe9   :  { %583 = vmatmul.mubr.bf16.gmra.mrb[16].mxu0 %v2838_v38  ;;  %655 = vmatmul.mubr.bf16.gmra.mrb[16].mxu1 %v2839_v39 }
  0xea   :  { %590 = vmatprep.mubr.bf16.mxu0 %v2840_v40  ;;  %662 = vmatprep.mubr.bf16.mxu1 %v2842_v41  ;;  %v3515_v12 = vpop.permute.xlu1 %335 }
  0xeb   :  { %1514 = vperm.xlu0 %2809, %v2266_v43  }
  0xec   :  { %1519 = vperm.xlu1 %2808, %v2267_v46  }
  0xee   :  { %v3521_v32 = vpop.permute.xlu1 %250 }
  0xef   :  { %1604 = vperm.xlu0 %2809, %v2284_v47  }
  0xf0   :  { %1609 = vperm.xlu1 %2808, %v2285_v52  }
  0xf1   :  { %591 = vmatmul.mubr.bf16.gmra.mrb[20].mxu0 %v2844_v48  ;;  %663 = vmatmul.mubr.bf16.gmra.mrb[20].mxu1 %v2845_v49 }
  0xf2   :  { %598 = vmatprep.mubr.bf16.mxu0 %v2846_v50  ;;  %670 = vmatprep.mubr.bf16.mxu1 %v2848_v51 }
  0xf3   :  { %1524 = vperm.xlu0 %2809, %v2268_v53  }
  0xf4   :  { %1529 = vperm.xlu1 %2808, %v2269_v55  }
  0xf9   :  { %599 = vmatmul.mubr.bf16.gmra.mrb[24].mxu0 %v2850_v57  ;;  %671 = vmatmul.mubr.bf16.gmra.mrb[24].mxu1 %v2851_v58 }
  0xfa   :  { %606 = vmatprep.mubr.bf16.mxu0 %v2852_v59  ;;  %1177 = vmatprep.mubr.bf16.mxu1 %v2860_v7 }
 0x101   :  { %607 = vmatmul.mubr.bf16.gmra.mrb[28].mxu0 %v2854_v61  ;;  %v3530_v61 = vpop.permute.xlu1 %255 }
 0x102   :  { %614 = vmatprep.mubr.bf16.mxu0 %v2855_v62 }
 0x109   :  { %615 = vmatmul.mubr.bf16.gmra.mrb[32].mxu0 %v2857_v63 }
 0x19c   :  { %v2336_v13 = vpop.f32.mrb[0].mxu0  ;;  %v2390_v14 = vpop.f32.mrb[0].mxu1 }
 0x19d   :  { %v2337_v15 = vpop.f32.mrb[1].mxu0  ;;  %v2391_v3 = vpop.f32.mrb[1].mxu1 }
 0x19e   :  { %v2338_v17 = vadd.f32 %v2337_v15, %v2336_v13  ;;  %v2392_v18 = vadd.f32 %v2391_v3, %v2390_v14  ;;  %v2339_v19 = vpop.f32.mrb[2].mxu0  ;;  %v2393_v20 = vpop.f32.mrb[2].mxu1 }
 0x19f   :  { %v2340_v21 = vpop.f32.mrb[3].mxu0  ;;  %v2394_v22 = vpop.f32.mrb[3].mxu1 }
 0x1a0   :  { %v553_v23 = vadd.f32 %v2338_v17, %v3311_v56  ;;  %v625_v25 = vadd.f32 %v2392_v18, %v3345_v9  ;;  %v2341_v26 = vadd.f32 %v2340_v21, %v2339_v19  ;;  %v2395_v27 = vadd.f32 %v2394_v22, %v2393_v20 }
 0x1a2   :  { %v679_v28 = vmul.f32 0.01, %v553_v23  ;;  %v556_v29 = vadd.f32 %v2341_v26, %v3331_v4  ;;  %v628_v30 = vadd.f32 %v2395_v27, %v3365_v16  ;;  %v697_v33 = vmul.f32 0.01, %v625_v25 }
 0x1a4   :  { %v680_v34 = vmul.f32 0.01, %v556_v29  ;;  %v698_v35 = vmul.f32 0.01, %v628_v30  ;;  %v2342_v38 = vpop.f32.mrb[4].mxu0  ;;  %v2396_v39 = vpop.f32.mrb[4].mxu1  ;;  %v711_v40 = vmax.f32 %v553_v23, %v679_v28  ;;  %v729_v49 = vmax.f32 %v625_v25, %v697_v33 }
 0x1a5   :  { %v2343_v41 = vpop.f32.mrb[5].mxu0  ;;  %v2397_v42 = vpop.f32.mrb[5].mxu1 }
 0x1a6   :  { %v712_v56 = vmax.f32 %v556_v29, %v680_v34  ;;  %v730_v43 = vmax.f32 %v628_v30, %v698_v35  ;;  %v2344_v9 = vadd.f32 %v2343_v41, %v2342_v38  ;;  %v2398_v46 = vadd.f32 %v2397_v42, %v2396_v39  ;;  %v2345_v47 = vpop.f32.mrb[6].mxu0  ;;  %v2399_v48 = vpop.f32.mrb[6].mxu1 }
 0x1a7   :  { %v2346_v4 = vpop.f32.mrb[7].mxu0  ;;  %v2400_v50 = vpop.f32.mrb[7].mxu1 }
 0x1a8   :  { %v3523_v16 = vpack.c.bf16 %v712_v56, %v711_v40  ;;  %v561_v51 = vadd.f32 %v2344_v9, %v3391_v24  ;;  %v633_v52 = vadd.f32 %v2398_v46, %v3425_v36  ;;  %v2347_v53 = vadd.f32 %v2346_v4, %v2345_v47  ;;  %v3540_v35 = vpop.permute.xlu1 %340  ;;  %v321_v38 = vpop.permute.xlu0 %320 }
 0x1a9   :  { %v2401_v55 = vadd.f32 %v2400_v50, %v2399_v48  ;;  %v3527_v57 = vpack.c.bf16 %v730_v43, %v729_v49 }
 0x1aa   :  { %v681_v58 = vmul.f32 0.01, %v561_v51  ;;  %v564_v59 = vadd.f32 %v2347_v53, %v3411_v31  ;;  %v699_v62 = vmul.f32 0.01, %v633_v52 }
 0x1ab   :  { %v636_v63 = vadd.f32 %v2401_v55, %v3445_v44 }
 0x1ac   :  { %v682_v7 = vmul.f32 0.01, %v564_v59  ;;  %v2348_v13 = vpop.f32.mrb[8].mxu0  ;;  %v2402_v14 = vpop.f32.mrb[8].mxu1  ;;  %v713_v17 = vmax.f32 %v561_v51, %v681_v58  ;;  %v731_v22 = vmax.f32 %v633_v52, %v699_v62 }
 0x1ad   :  { %v700_v15 = vmul.f32 0.01, %v636_v63  ;;  %v2349_v3 = vpop.f32.mrb[9].mxu0  ;;  %v2403_v24 = vpop.f32.mrb[9].mxu1 }
 0x1ae   :  { %v714_v36 = vmax.f32 %v564_v59, %v682_v7  ;;  %v2350_v18 = vadd.f32 %v2349_v3, %v2348_v13  ;;  %v2404_v19 = vadd.f32 %v2403_v24, %v2402_v14  ;;  %v2351_v20 = vpop.f32.mrb[10].mxu0  ;;  %v2405_v21 = vpop.f32.mrb[10].mxu1 }
 0x1af   :  { %v732_v23 = vmax.f32 %v636_v63, %v700_v15  ;;  %v2352_v31 = vpop.f32.mrb[11].mxu0  ;;  %v2406_v25 = vpop.f32.mrb[11].mxu1 }
 0x1b0   :  { %v3533_v26 = vpack.c.bf16 %v714_v36, %v713_v17  ;;  %v569_v44 = vadd.f32 %v2350_v18, %v3471_v54  ;;  %v641_v27 = vadd.f32 %v2404_v19, %v3496_v0  ;;  %v2353_v28 = vadd.f32 %v2352_v31, %v2351_v20  ;;  %v346_v14 = vpop.permute.xlu1 %345 }
 0x1b1   :  { %v2407_v29 = vadd.f32 %v2406_v25, %v2405_v21  ;;  %v3537_v30 = vpack.c.bf16 %v732_v23, %v731_v22 }
 0x1b2   :  { %v683_v33 = vmul.f32 0.01, %v569_v44  ;;  %v572_v34 = vadd.f32 %v2353_v28, %v3485_v60  ;;  %v701_v39 = vmul.f32 0.01, %v641_v27 }
 0x1b3   :  { %v644_v40 = vadd.f32 %v2407_v29, %v3498_v1 }
 0x1b4   :  { %v684_v41 = vmul.f32 0.01, %v572_v34  ;;  %v2354_v42 = vpop.f32.mrb[12].mxu0  ;;  %v2408_v56 = vpop.f32.mrb[12].mxu1  ;;  %v715_v0 = vmax.f32 %v569_v44, %v683_v33  ;;  %v733_v50 = vmax.f32 %v641_v27, %v701_v39 }
 0x1b5   :  { %v702_v43 = vmul.f32 0.01, %v644_v40  ;;  %v2355_v54 = vpop.f32.mrb[13].mxu0  ;;  %v2409_v9 = vpop.f32.mrb[13].mxu1 }
 0x1b6   :  { %v716_v46 = vmax.f32 %v572_v34, %v684_v41  ;;  %v2356_v47 = vadd.f32 %v2355_v54, %v2354_v42  ;;  %v2410_v48 = vadd.f32 %v2409_v9, %v2408_v56  ;;  %v2357_v49 = vpop.f32.mrb[14].mxu0  ;;  %v2411_v4 = vpop.f32.mrb[14].mxu1 }
 0x1b7   :  { %v734_v60 = vmax.f32 %v644_v40, %v702_v43  ;;  %v2358_v51 = vpop.f32.mrb[15].mxu0  ;;  %v2412_v52 = vpop.f32.mrb[15].mxu1 }
 0x1b8   :  { %v3543_v53 = vpack.c.bf16 %v716_v46, %v715_v0  ;;  %v577_v1 = vadd.f32 %v2356_v47, %v3500_v2  ;;  %v649_v55 = vadd.f32 %v2410_v48, %v321_v38  ;;  %v2359_v58 = vadd.f32 %v2358_v51, %v2357_v49  ;;  %v261_v41 = vpop.permute.xlu1 %260 }
 0x1b9   :  { %v2413_v59 = vadd.f32 %v2412_v52, %v2411_v4  ;;  %v3546_v62 = vpack.c.bf16 %v734_v60, %v733_v50 }
 0x1ba   :  { %v685_v63 = vmul.f32 0.01, %v577_v1  ;;  %v703_v7 = vmul.f32 0.01, %v649_v55  ;;  %v580_v13 = vadd.f32 %v2359_v58, %v3502_v5 }
 0x1bb   :  { %v652_v15 = vadd.f32 %v2413_v59, %v3504_v6 }
 0x1bc   :  { %v686_v3 = vmul.f32 0.01, %v580_v13  ;;  %v2360_v24 = vpop.f32.mrb[16].mxu0  ;;  %v2414_v17 = vpop.f32.mrb[16].mxu1  ;;  %v735_v36 = vmax.f32 %v649_v55, %v703_v7  ;;  %v717_v2 = vmax.f32 %v577_v1, %v685_v63 }
 0x1bd   :  { %v704_v18 = vmul.f32 0.01, %v652_v15  ;;  %v2361_v19 = vpop.f32.mrb[17].mxu0  ;;  %v2415_v20 = vpop.f32.mrb[17].mxu1 }
 0x1be   :  { %v718_v21 = vmax.f32 %v580_v13, %v686_v3  ;;  %v2362_v22 = vadd.f32 %v2361_v19, %v2360_v24  ;;  %v2416_v23 = vadd.f32 %v2415_v20, %v2414_v17  ;;  %v2363_v31 = vpop.f32.mrb[18].mxu0  ;;  %v2417_v25 = vpop.f32.mrb[18].mxu1 }
 0x1bf   :  { %v736_v44 = vmax.f32 %v652_v15, %v704_v18  ;;  %v2364_v27 = vpop.f32.mrb[19].mxu0  ;;  %v2418_v28 = vpop.f32.mrb[19].mxu1 }
 0x1c0   :  { %v3550_v5 = vpack.c.bf16 %v718_v21, %v717_v2  ;;  %v585_v6 = vadd.f32 %v2362_v22, %v3509_v8  ;;  %v657_v29 = vadd.f32 %v2416_v23, %v3513_v11  ;;  %v2365_v33 = vadd.f32 %v2364_v27, %v2363_v31  ;;  %v266_v15 = vpop.permute.xlu1 %265  ;;  %v351_v3 = vpop.permute.xlu0 %350 }
 0x1c1   :  { %v2419_v34 = vadd.f32 %v2418_v28, %v2417_v25  ;;  %v3554_v38 = vpack.c.bf16 %v736_v44, %v735_v36 }
 0x1c2   :  { %v687_v39 = vmul.f32 0.01, %v585_v6  ;;  %v588_v40 = vadd.f32 %v2365_v33, %v3511_v10  ;;  %v705_v42 = vmul.f32 0.01, %v657_v29 }
 0x1c3   :  { %v660_v56 = vadd.f32 %v2419_v34, %v3515_v12 }
 0x1c4   :  { %v688_v43 = vmul.f32 0.01, %v588_v40  ;;  %v2366_v54 = vpop.f32.mrb[20].mxu0  ;;  %v2420_v9 = vpop.f32.mrb[20].mxu1  ;;  %v719_v8 = vmax.f32 %v585_v6, %v687_v39  ;;  %v737_v60 = vmax.f32 %v657_v29, %v705_v42 }
 0x1c5   :  { %v706_v0 = vmul.f32 0.01, %v660_v56  ;;  %v2367_v46 = vpop.f32.mrb[21].mxu0  ;;  %v2421_v47 = vpop.f32.mrb[21].mxu1 }
 0x1c6   :  { %v720_v48 = vmax.f32 %v588_v40, %v688_v43  ;;  %v2368_v11 = vadd.f32 %v2367_v46, %v2366_v54  ;;  %v2422_v49 = vadd.f32 %v2421_v47, %v2420_v9  ;;  %v2369_v4 = vpop.f32.mrb[22].mxu0  ;;  %v2423_v50 = vpop.f32.mrb[22].mxu1 }
 0x1c7   :  { %v738_v51 = vmax.f32 %v660_v56, %v706_v0  ;;  %v2370_v52 = vpop.f32.mrb[23].mxu0  ;;  %v2424_v10 = vpop.f32.mrb[23].mxu1 }
 0x1c8   :  { %v3558_v1 = vpack.c.bf16 %v720_v48, %v719_v8  ;;  %v593_v12 = vadd.f32 %v2368_v11, %v3521_v32  ;;  %v665_v55 = vadd.f32 %v2422_v49, %v3540_v35  ;;  %v2371_v58 = vadd.f32 %v2370_v52, %v2369_v4  ;;  %v356_v40 = vpop.permute.xlu1 %355 }
 0x1c9   :  { %v2425_v59 = vadd.f32 %v2424_v10, %v2423_v50  ;;  %v3562_v63 = vpack.c.bf16 %v738_v51, %v737_v60  ;;  %v271_v50 = vpop.permute.xlu0 %270 }
 0x1ca   :  { %v689_v7 = vmul.f32 0.01, %v593_v12  ;;  %v596_v13 = vadd.f32 %v2371_v58, %v3530_v61  ;;  %v707_v24 = vmul.f32 0.01, %v665_v55 }
 0x1cb   :  { %v668_v17 = vadd.f32 %v2425_v59, %v346_v14 }
 0x1cc   :  { %v690_v36 = vmul.f32 0.01, %v596_v13  ;;  %v2372_v18 = vpop.f32.mrb[24].mxu0  ;;  %v2426_v19 = vpop.f32.mrb[24].mxu1  ;;  %v721_v32 = vmax.f32 %v593_v12, %v689_v7  ;;  %v739_v44 = vmax.f32 %v665_v55, %v707_v24 }
 0x1cd   :  { %v708_v20 = vmul.f32 0.01, %v668_v17  ;;  %v2373_v2 = vpop.f32.mrb[25].mxu0  ;;  %v2427_v21 = vpop.f32.mrb[25].mxu1 }
 0x1ce   :  { %v722_v22 = vmax.f32 %v596_v13, %v690_v36  ;;  %v2374_v35 = vadd.f32 %v2373_v2, %v2372_v18  ;;  %v2428_v23 = vadd.f32 %v2427_v21, %v2426_v19  ;;  %v2375_v31 = vpop.f32.mrb[26].mxu0  ;;  %v2429_v25 = vpop.f32.mrb[26].mxu1 }
 0x1cf   :  { %v740_v27 = vmax.f32 %v668_v17, %v708_v20  ;;  %v2376_v28 = vpop.f32.mrb[27].mxu0  ;;  %v2430_v61 = vpop.f32.mrb[27].mxu1 }
 0x1d0   :  { %v748_v6 = vpack.c.bf16 %v722_v22, %v721_v32  ;;  %v601_v29 = vadd.f32 %v2374_v35, %v261_v41  ;;  %v673_v33 = vadd.f32 %v2428_v23, %v351_v3  ;;  %v2377_v14 = vadd.f32 %v2376_v28, %v2375_v31  ;;  %v276_v12 = vpop.permute.xlu1 %275  ;;  %v2882_v28 = vld [vmem:[%s3933_s1 + $0x184] ss:$8 sps:$4 sm:$0xff]  }
 0x1d1   :  { %v2431_v34 = vadd.f32 %v2430_v61, %v2429_v25  ;;  %v757_v39 = vpack.c.bf16 %v740_v27, %v739_v44  ;;  %v2878_v25 = vld [vmem:[%s3933_s1 + $0x160] ss:$8 sps:$4 sm:$0xff]   ;;  %v2879_v44 = vld [vmem:[%s3933_s1 + $0x174] ss:$8 sps:$4 sm:$0xff]   ;;  %v2881_v27 = vld [vmem:[%s3933_s1 + $0x170] ss:$8 sps:$4 sm:$0xff]  }
 0x1d2   :  { %v691_v42 = vmul.f32 0.01, %v601_v29  ;;  %v709_v56 = vmul.f32 0.01, %v673_v33  ;;  %v604_v43 = vadd.f32 %v2377_v14, %v266_v15  ;;  %v2884_v61 = vld [vmem:[%s3933_s1 + $0x180] ss:$8 sps:$4 sm:$0xff]  }
 0x1d3   :  { %v676_v54 = vadd.f32 %v2431_v34, %v356_v40  ;;  %v2890_v14 = vld [vmem:[%s3933_s1 + $0x1a0] ss:$8 sps:$4 sm:$0xff]   ;;  %v2891_v34 = vld [vmem:[%s3933_s1 + $0x1b4] ss:$8 sps:$4 sm:$0xff]   ;;  %v2894_v40 = vld [vmem:[%s3933_s1 + $0x1c4] ss:$8 sps:$4 sm:$0xff]  }
 0x1d4   :  { %v692_v9 = vmul.f32 0.01, %v604_v43  ;;  %v2378_v0 = vpop.f32.mrb[28].mxu0  ;;  %v741_v46 = vmax.f32 %v673_v33, %v709_v56  ;;  %v723_v48 = vmax.f32 %v601_v29, %v691_v42  ;;  %v2887_v29 = vld [vmem:[%s3933_s1 + $0x190] ss:$8 sps:$4 sm:$0xff]  }
 0x1d5   :  { %v710_v47 = vmul.f32 0.01, %v676_v54  ;;  %v2379_v8 = vpop.f32.mrb[29].mxu0  ;;  %v2888_v33 = vld [vmem:[%s3933_s1 + $0x1a4] ss:$8 sps:$4 sm:$0xff]  }
 0x1d6   :  { %v724_v11 = vmax.f32 %v604_v43, %v692_v9  ;;  %v2380_v49 = vadd.f32 %v2379_v8, %v2378_v0  ;;  %v2381_v4 = vpop.f32.mrb[30].mxu0  ;;  %v2896_v42 = vld [vmem:[%s3933_s1 + $0x1c0] ss:$8 sps:$4 sm:$0xff]   ;;  %v2897_v56 = vld [vmem:[%s3933_s1 + $0x1d4] ss:$8 sps:$4 sm:$0xff]   ;;  %v3672_v8 = vpop.permute.xlu1 %912 }
 0x1d7   :  { %v742_v41 = vmax.f32 %v676_v54, %v710_v47  ;;  %v2382_v60 = vpop.f32.mrb[31].mxu0  ;;  %v2899_v43 = vld [vmem:[%s3933_s1 + $0x1d0] ss:$8 sps:$4 sm:$0xff]   ;;  %v2900_v54 = vld [vmem:[%s3933_s1 + $0x1e4] ss:$8 sps:$4 sm:$0xff]   ;;  %v3670_v47 = vpop.permute.xlu0 %907 }
 0x1d8   :  { %v749_v51 = vpack.c.bf16 %v724_v11, %v723_v48  ;;  %v609_v52 = vadd.f32 %v2380_v49, %v271_v50  ;;  %v2383_v10 = vadd.f32 %v2382_v60, %v2381_v4  ;;  %v2902_v9 = vld [vmem:[%s3933_s1 + $0x1e0] ss:$8 sps:$4 sm:$0xff]   ;;  %v2903_v0 = vld [vmem:[%s3933_s1 + $0x1f4] ss:$8 sps:$4 sm:$0xff]  }
 0x1d9   :  { %v758_v55 = vpack.c.bf16 %v742_v41, %v741_v46  ;;  %v2905_v46 = vld [vmem:[%s3933_s1 + $0x1f0] ss:$8 sps:$4 sm:$0xff]  }
 0x1da   :  { %v693_v58 = vmul.f32 0.01, %v609_v52  ;;  %v612_v59 = vadd.f32 %v2383_v10, %v276_v12  ;;  %v833_v11 = vpop.permute.xlu1 %832 }
 0x1db   :  { %v828_v48 = vpop.permute.xlu0 %827 }
 0x1dc   :  { %v694_v7 = vmul.f32 0.01, %v612_v59  ;;  %v2384_v13 = vpop.f32.mrb[32].mxu0  ;;  %v725_v3 = vmax.f32 %v609_v52, %v693_v58 }
 0x1dd   :  { %v2385_v15 = vpop.f32.mrb[33].mxu0 }
 0x1de   :  { %v726_v24 = vmax.f32 %v612_v59, %v694_v7  ;;  %v2386_v17 = vadd.f32 %v2385_v15, %v2384_v13  ;;  %v2387_v36 = vpop.f32.mrb[34].mxu0  ;;  %v3676_v4 = vpop.permute.xlu1 %922 }
 0x1df   :  { %v2388_v18 = vpop.f32.mrb[35].mxu0  ;;  %v3674_v49 = vpop.permute.xlu0 %917 }
 0x1e0   :  { %v750_v19 = vpack.c.bf16 %v726_v24, %v725_v3  ;;  %v617_v20 = vadd.f32 %v2386_v17, %v3289_v37  ;;  %v2389_v2 = vadd.f32 %v2388_v18, %v2387_v36  ;;  %v2858_v37 = vld [vmem:[%s3933_s1 + $0x100] ss:$8 sps:$4 sm:$0xff]   ;;  %v2908_v18 = vld [vmem:[%s3933_s1 + $0x204] ss:$8 sps:$4 sm:$0xff]  }
 0x1e1   :  { %1804 = vmatprep.mubr.bf16.mxu0 %v2908_v18 }
 0x1e2   :  { %v695_v21 = vmul.f32 0.01, %v617_v20  ;;  %v620_v32 = vadd.f32 %v2389_v2, %v3297_v45  ;;  %v2861_v45 = vld [vmem:[%s3933_s1 + $0x114] ss:$8 sps:$4 sm:$0xff]   ;;  %v843_v41 = vpop.permute.xlu1 %842 }
 0x1e3   :  { %v838_v50 = vpop.permute.xlu0 %837 }
 0x1e4   :  { %v696_v22 = vmul.f32 0.01, %v620_v32  ;;  %v727_v35 = vmax.f32 %v617_v20, %v695_v21 }
 0x1e6   :  { %v728_v23 = vmax.f32 %v620_v32, %v696_v22 }
 0x1e7   :  { %v3678_v60 = vpop.permute.xlu0 %927 }
 0x1e8   :  { %v751_v31 = vpack.c.bf16 %v728_v23, %v727_v35 }
 0x1ea   :  { %2432 = vmatprep.subr.bf16.mxu1 %v751_v31 }
 0x1eb   :  { %2433 = vmatpush3.bf16.msra.mxu1 %v3523_v16  ;;  %v2863_v16 = vld [vmem:[%s3933_s1 + $0x110] ss:$8 sps:$4 sm:$0xff]   ;;  %v848_v52 = vpop.permute.xlu0 %847 }
 0x1ec   :  { %2434 = vmatprep.subr.bf16.mxu1 %v3527_v57  ;;  %v2864_v57 = vld [vmem:[%s3933_s1 + $0x124] ss:$8 sps:$4 sm:$0xff]  }
 0x1ef   :  { %2435 = vmatpush3.bf16.msra.mxu1 %v3533_v26  ;;  %v2866_v26 = vld [vmem:[%s3933_s1 + $0x120] ss:$8 sps:$4 sm:$0xff]   ;;  %v3682_v3 = vpop.permute.xlu0 %937 }
 0x1f0   :  { %2436 = vmatprep.subr.bf16.mxu1 %v3537_v30  ;;  %v2867_v30 = vld [vmem:[%s3933_s1 + $0x134] ss:$8 sps:$4 sm:$0xff]  }
 0x1f3   :  { %2437 = vmatpush3.bf16.msra.mxu1 %v3543_v53  ;;  %v2869_v53 = vld [vmem:[%s3933_s1 + $0x130] ss:$8 sps:$4 sm:$0xff]   ;;  %v858_v23 = vpop.permute.xlu0 %857 }
 0x1f4   :  { %2438 = vmatprep.subr.bf16.mxu1 %v3546_v62  ;;  %v2870_v62 = vld [vmem:[%s3933_s1 + $0x144] ss:$8 sps:$4 sm:$0xff]  }
 0x1f7   :  { %2439 = vmatpush3.bf16.msra.mxu1 %v3550_v5  ;;  %v2872_v5 = vld [vmem:[%s3933_s1 + $0x140] ss:$8 sps:$4 sm:$0xff]  }
 0x1f8   :  { %2440 = vmatprep.subr.bf16.mxu1 %v3554_v38  ;;  %v2873_v38 = vld [vmem:[%s3933_s1 + $0x154] ss:$8 sps:$4 sm:$0xff]  }
 0x1fb   :  { %2441 = vmatpush3.bf16.msra.mxu1 %v3558_v1  ;;  %v2875_v1 = vld [vmem:[%s3933_s1 + $0x150] ss:$8 sps:$4 sm:$0xff]  }
 0x1fc   :  { %2442 = vmatprep.subr.bf16.mxu1 %v3562_v63  ;;  %v2876_v63 = vld [vmem:[%s3933_s1 + $0x164] ss:$8 sps:$4 sm:$0xff]  }
 0x1ff   :  { %2443 = vmatpush3.bf16.msra.mxu1 %v748_v6  ;;  %v2885_v6 = vld [vmem:[%s3933_s1 + $0x194] ss:$8 sps:$4 sm:$0xff]  }
 0x200   :  { %2444 = vmatprep.subr.bf16.mxu1 %v757_v39  ;;  %v2893_v39 = vld [vmem:[%s3933_s1 + $0x1b0] ss:$8 sps:$4 sm:$0xff]  }
 0x203   :  { %2445 = vmatpush3.bf16.msra.mxu1 %v749_v51  ;;  %v3680_v51 = vpop.permute.xlu1 %932 }
 0x204   :  { %2446 = vmatprep.subr.bf16.mxu1 %v758_v55 }
 0x207   :  { %2447 = vmatpush3.bf16.msra.mxu1 %v750_v19  ;;  %v853_v12 = vpop.permute.xlu1 %852 }
 0x20a   :  { %1178 = vmatmul.mubr.bf16.vlgmr.msra.gmra.mrb[28].mxu1 %v2858_v37 }
 0x20b   :  { %1185 = vmatprep.mubr.bf16.mxu1 %v2861_v45  ;;  %v3684_v36 = vpop.permute.xlu1 %942 }
 0x212   :  { %1186 = vmatmul.mubr.bf16.gmra.mrb[32].mxu1 %v2863_v16 }
 0x213   :  { %1193 = vmatprep.mubr.bf16.mxu1 %v2864_v57  ;;  %v863_v57 = vpop.permute.xlu1 %862 }
 0x21a   :  { %1194 = vmatmul.mubr.bf16.gmra.mrb[36].mxu1 %v2866_v26 }
 0x21b   :  { %1201 = vmatprep.mubr.bf16.mxu1 %v2867_v30 }
 0x222   :  { %1202 = vmatmul.mubr.bf16.gmra.mrb[40].mxu1 %v2869_v53 }
 0x223   :  { %1209 = vmatprep.mubr.bf16.mxu1 %v2870_v62 }
 0x22a   :  { %1210 = vmatmul.mubr.bf16.gmra.mrb[44].mxu1 %v2872_v5  ;;  %v3691_v5 = vpop.permute.xlu0 %947 }
 0x22b   :  { %1217 = vmatprep.mubr.bf16.mxu1 %v2873_v38 }
 0x232   :  { %1218 = vmatmul.mubr.bf16.gmra.mrb[48].mxu1 %v2875_v1 }
 0x233   :  { %1225 = vmatprep.mubr.bf16.mxu1 %v2876_v63 }
 0x23a   :  { %1226 = vmatmul.mubr.bf16.gmra.mrb[52].mxu1 %v2878_v25 }
 0x23b   :  { %1233 = vmatprep.mubr.bf16.mxu1 %v2879_v44 }
 0x242   :  { %1234 = vmatmul.mubr.bf16.gmra.mrb[56].mxu1 %v2881_v27  ;;  %v3693_v27 = vpop.permute.xlu1 %952 }
 0x243   :  { %1241 = vmatprep.mubr.bf16.mxu1 %v2882_v28 }
 0x24a   :  { %1242 = vmatmul.mubr.bf16.gmra.mrb[60].mxu1 %v2884_v61 }
 0x24b   :  { %1249 = vmatprep.mubr.bf16.mxu1 %v2885_v6 }
 0x252   :  { %1250 = vmatmul.mubr.bf16.gmra.mrb[64].mxu1 %v2887_v29 }
 0x253   :  { %1257 = vmatprep.mubr.bf16.mxu1 %v2888_v33 }
 0x25a   :  { %1258 = vmatmul.mubr.bf16.gmra.mrb[68].mxu1 %v2890_v14 }
 0x25b   :  { %1265 = vmatprep.mubr.bf16.mxu1 %v2891_v34  ;;  %v868_v34 = vpop.permute.xlu0 %867 }
 0x262   :  { %1266 = vmatmul.mubr.bf16.gmra.mrb[72].mxu1 %v2893_v39 }
 0x263   :  { %1273 = vmatprep.mubr.bf16.mxu1 %v2894_v40 }
 0x26a   :  { %1274 = vmatmul.mubr.bf16.gmra.mrb[76].mxu1 %v2896_v42  ;;  %v873_v42 = vpop.permute.xlu1 %872 }
 0x26b   :  { %1281 = vmatprep.mubr.bf16.mxu1 %v2897_v56 }
 0x272   :  { %1282 = vmatmul.mubr.bf16.gmra.mrb[80].mxu1 %v2899_v43 }
 0x273   :  { %1289 = vmatprep.mubr.bf16.mxu1 %v2900_v54 }
 0x27a   :  { %1290 = vmatmul.mubr.bf16.gmra.mrb[84].mxu1 %v2902_v9 }
 0x27b   :  { %1297 = vmatprep.mubr.bf16.mxu1 %v2903_v0 }
 0x282   :  { %1298 = vmatmul.mubr.bf16.gmra.mrb[88].mxu1 %v2905_v46 }
 0x2dd   :  { %v2448_v10 = vpop.f32.mrb[28].mxu1 }
 0x2de   :  { %v2449_v55 = vpop.f32.mrb[29].mxu1 }
 0x2df   :  { %v2450_v58 = vadd.f32 %v2449_v55, %v2448_v10  ;;  %v2451_v59 = vpop.f32.mrb[30].mxu1  ;;  %v3701_v55 = vpop.permute.xlu1 %962 }
 0x2e0   :  { %v2452_v7 = vpop.f32.mrb[31].mxu1 }
 0x2e1   :  { %v1180_v13 = vadd.f32 %v2450_v58, %v828_v48  ;;  %v2453_v15 = vadd.f32 %v2452_v7, %v2451_v59 }
 0x2e3   :  { %v1306_v24 = vmul.f32 0.01, %v1180_v13  ;;  %v1183_v17 = vadd.f32 %v2453_v15, %v833_v11 }
 0x2e5   :  { %v1307_v19 = vmul.f32 0.01, %v1183_v17  ;;  %v2454_v20 = vpop.f32.mrb[32].mxu1  ;;  %v1338_v21 = vmax.f32 %v1180_v13, %v1306_v24 }
 0x2e6   :  { %v2455_v2 = vpop.f32.mrb[33].mxu1 }
 0x2e7   :  { %v1339_v32 = vmax.f32 %v1183_v17, %v1307_v19  ;;  %v2456_v22 = vadd.f32 %v2455_v2, %v2454_v20  ;;  %v2457_v35 = vpop.f32.mrb[34].mxu1 }
 0x2e8   :  { %v2458_v31 = vpop.f32.mrb[35].mxu1 }
 0x2e9   :  { %v3689_v37 = vpack.c.bf16 %v1339_v32, %v1338_v21  ;;  %v1188_v45 = vadd.f32 %v2456_v22, %v838_v50  ;;  %v2459_v16 = vadd.f32 %v2458_v31, %v2457_v35  ;;  %v883_v21 = vpop.permute.xlu1 %882 }
 0x2eb   :  { %v1308_v26 = vmul.f32 0.01, %v1188_v45  ;;  %v1191_v30 = vadd.f32 %v2459_v16, %v843_v41  ;;  %v3699_v41 = vpop.permute.xlu0 %957 }
 0x2ed   :  { %v1309_v53 = vmul.f32 0.01, %v1191_v30  ;;  %v2460_v62 = vpop.f32.mrb[36].mxu1  ;;  %v1340_v1 = vmax.f32 %v1188_v45, %v1308_v26 }
 0x2ee   :  { %v2461_v38 = vpop.f32.mrb[37].mxu1 }
 0x2ef   :  { %v1341_v63 = vmax.f32 %v1191_v30, %v1309_v53  ;;  %v2462_v25 = vadd.f32 %v2461_v38, %v2460_v62  ;;  %v2463_v44 = vpop.f32.mrb[38].mxu1  ;;  %v878_v17 = vpop.permute.xlu0 %877 }
 0x2f0   :  { %v2464_v28 = vpop.f32.mrb[39].mxu1  ;;  %v3707_v53 = vpop.permute.xlu1 %972 }
 0x2f1   :  { %v3695_v61 = vpack.c.bf16 %v1341_v63, %v1340_v1  ;;  %v1196_v6 = vadd.f32 %v2462_v25, %v848_v52  ;;  %v2465_v29 = vadd.f32 %v2464_v28, %v2463_v44 }
 0x2f3   :  { %v1310_v33 = vmul.f32 0.01, %v1196_v6  ;;  %v1199_v14 = vadd.f32 %v2465_v29, %v853_v12  ;;  %v3705_v31 = vpop.permute.xlu0 %967 }
 0x2f5   :  { %v1311_v39 = vmul.f32 0.01, %v1199_v14  ;;  %v2466_v40 = vpop.f32.mrb[40].mxu1  ;;  %v1342_v43 = vmax.f32 %v1196_v6, %v1310_v33  ;;  %v893_v33 = vpop.permute.xlu1 %892 }
 0x2f6   :  { %v2467_v56 = vpop.f32.mrb[41].mxu1 }
 0x2f7   :  { %v1343_v54 = vmax.f32 %v1199_v14, %v1311_v39  ;;  %v2468_v9 = vadd.f32 %v2467_v56, %v2466_v40  ;;  %v2469_v0 = vpop.f32.mrb[42].mxu1  ;;  %v888_v28 = vpop.permute.xlu0 %887 }
 0x2f8   :  { %v2470_v46 = vpop.f32.mrb[43].mxu1 }
 0x2f9   :  { %v3697_v48 = vpack.c.bf16 %v1343_v54, %v1342_v43  ;;  %v1204_v11 = vadd.f32 %v2468_v9, %v858_v23  ;;  %v2471_v50 = vadd.f32 %v2470_v46, %v2469_v0 }
 0x2fb   :  { %v1312_v52 = vmul.f32 0.01, %v1204_v11  ;;  %v1207_v10 = vadd.f32 %v2471_v50, %v863_v57  ;;  %v3713_v0 = vpop.permute.xlu0 %977  ;;  %v3715_v50 = vpop.permute.xlu1 %982 }
 0x2fd   :  { %v1313_v12 = vmul.f32 0.01, %v1207_v10  ;;  %v2472_v58 = vpop.f32.mrb[44].mxu1  ;;  %v1344_v7 = vmax.f32 %v1204_v11, %v1312_v52 }
 0x2fe   :  { %v2473_v59 = vpop.f32.mrb[45].mxu1 }
 0x2ff   :  { %v1345_v13 = vmax.f32 %v1207_v10, %v1313_v12  ;;  %v2474_v15 = vadd.f32 %v2473_v59, %v2472_v58  ;;  %v2475_v24 = vpop.f32.mrb[46].mxu1 }
 0x300   :  { %v2476_v18 = vpop.f32.mrb[47].mxu1 }
 0x301   :  { %v3703_v19 = vpack.c.bf16 %v1345_v13, %v1344_v7  ;;  %v1212_v20 = vadd.f32 %v2474_v15, %v868_v34  ;;  %v2477_v2 = vadd.f32 %v2476_v18, %v2475_v24  ;;  %v898_v15 = vpop.permute.xlu0 %897 }
 0x303   :  { %v1314_v32 = vmul.f32 0.01, %v1212_v20  ;;  %v1215_v22 = vadd.f32 %v2477_v2, %v873_v42  ;;  %v903_v2 = vpop.permute.xlu1 %902 }
 0x305   :  { %v1315_v35 = vmul.f32 0.01, %v1215_v22  ;;  %v2478_v23 = vpop.f32.mrb[48].mxu1  ;;  %v1346_v16 = vmax.f32 %v1212_v20, %v1314_v32 }
 0x306   :  { %v2479_v45 = vpop.f32.mrb[49].mxu1 }
 0x307   :  { %v1347_v57 = vmax.f32 %v1215_v22, %v1315_v35  ;;  %v2480_v26 = vadd.f32 %v2479_v45, %v2478_v23  ;;  %v2481_v30 = vpop.f32.mrb[50].mxu1 }
 0x308   :  { %v2482_v62 = vpop.f32.mrb[51].mxu1 }
 0x309   :  { %v3709_v38 = vpack.c.bf16 %v1347_v57, %v1346_v16  ;;  %v1220_v1 = vadd.f32 %v2480_v26, %v878_v17  ;;  %v2483_v63 = vadd.f32 %v2482_v62, %v2481_v30 }
 0x30b   :  { %v1316_v25 = vmul.f32 0.01, %v1220_v1  ;;  %v1223_v44 = vadd.f32 %v2483_v63, %v883_v21 }
 0x30d   :  { %v1317_v6 = vmul.f32 0.01, %v1223_v44  ;;  %v2484_v29 = vpop.f32.mrb[52].mxu1  ;;  %v1348_v34 = vmax.f32 %v1220_v1, %v1316_v25 }
 0x30e   :  { %v2485_v14 = vpop.f32.mrb[53].mxu1 }
 0x30f   :  { %v1349_v39 = vmax.f32 %v1223_v44, %v1317_v6  ;;  %v2486_v40 = vadd.f32 %v2485_v14, %v2484_v29  ;;  %v2487_v42 = vpop.f32.mrb[54].mxu1 }
 0x310   :  { %v2488_v56 = vpop.f32.mrb[55].mxu1 }
 0x311   :  { %v3711_v43 = vpack.c.bf16 %v1349_v39, %v1348_v34  ;;  %v1228_v54 = vadd.f32 %v2486_v40, %v888_v28  ;;  %v2489_v9 = vadd.f32 %v2488_v56, %v2487_v42 }
 0x313   :  { %v1318_v46 = vmul.f32 0.01, %v1228_v54  ;;  %v1231_v11 = vadd.f32 %v2489_v9, %v893_v33 }
 0x315   :  { %v1319_v52 = vmul.f32 0.01, %v1231_v11  ;;  %v2490_v10 = vpop.f32.mrb[56].mxu1  ;;  %v1350_v58 = vmax.f32 %v1228_v54, %v1318_v46 }
 0x316   :  { %v2491_v12 = vpop.f32.mrb[57].mxu1 }
 0x317   :  { %v1351_v59 = vmax.f32 %v1231_v11, %v1319_v52  ;;  %v2492_v7 = vadd.f32 %v2491_v12, %v2490_v10  ;;  %v2493_v13 = vpop.f32.mrb[58].mxu1 }
 0x318   :  { %v2494_v24 = vpop.f32.mrb[59].mxu1 }
 0x319   :  { %v3717_v17 = vpack.c.bf16 %v1351_v59, %v1350_v58  ;;  %v1236_v18 = vadd.f32 %v2492_v7, %v898_v15  ;;  %v2495_v20 = vadd.f32 %v2494_v24, %v2493_v13 }
 0x31b   :  { %v1320_v21 = vmul.f32 0.01, %v1236_v18  ;;  %v1239_v32 = vadd.f32 %v2495_v20, %v903_v2 }
 0x31d   :  { %v1321_v22 = vmul.f32 0.01, %v1239_v32  ;;  %v2496_v35 = vpop.f32.mrb[60].mxu1  ;;  %v1352_v45 = vmax.f32 %v1236_v18, %v1320_v21 }
 0x31e   :  { %v2497_v23 = vpop.f32.mrb[61].mxu1 }
 0x31f   :  { %v1353_v16 = vmax.f32 %v1239_v32, %v1321_v22  ;;  %v2498_v57 = vadd.f32 %v2497_v23, %v2496_v35  ;;  %v2499_v26 = vpop.f32.mrb[62].mxu1 }
 0x320   :  { %v2500_v30 = vpop.f32.mrb[63].mxu1 }
 0x321   :  { %v3719_v62 = vpack.c.bf16 %v1353_v16, %v1352_v45  ;;  %v1244_v1 = vadd.f32 %v2498_v57, %v3670_v47  ;;  %v2501_v63 = vadd.f32 %v2500_v30, %v2499_v26 }
 0x323   :  { %v1322_v25 = vmul.f32 0.01, %v1244_v1  ;;  %v1247_v44 = vadd.f32 %v2501_v63, %v3672_v8 }
 0x325   :  { %v1323_v28 = vmul.f32 0.01, %v1247_v44  ;;  %v2502_v6 = vpop.f32.mrb[64].mxu1  ;;  %v1354_v33 = vmax.f32 %v1244_v1, %v1322_v25 }
 0x326   :  { %v2503_v29 = vpop.f32.mrb[65].mxu1 }
 0x327   :  { %v1355_v14 = vmax.f32 %v1247_v44, %v1323_v28  ;;  %v2504_v34 = vadd.f32 %v2503_v29, %v2502_v6  ;;  %v2505_v39 = vpop.f32.mrb[66].mxu1 }
 0x328   :  { %v2506_v40 = vpop.f32.mrb[67].mxu1 }
 0x329   :  { %v1252_v42 = vadd.f32 %v2504_v34, %v3674_v49  ;;  %v2507_v56 = vadd.f32 %v2506_v40, %v2505_v39  ;;  %v1378_v54 = vpack.c.bf16 %v1355_v14, %v1354_v33 }
 0x32b   :  { %v1324_v9 = vmul.f32 0.01, %v1252_v42  ;;  %v1255_v46 = vadd.f32 %v2507_v56, %v3676_v4  ;;  %2544 = vmatprep.subr.bf16.mxu0 %v1378_v54 }
 0x32c   :  { %2545 = vmatpush3.bf16.msra.mxu0 %v3689_v37 }
 0x32d   :  { %v1325_v47 = vmul.f32 0.01, %v1255_v46  ;;  %v2508_v8 = vpop.f32.mrb[68].mxu1  ;;  %v1356_v52 = vmax.f32 %v1252_v42, %v1324_v9 }
 0x32e   :  { %v2509_v11 = vpop.f32.mrb[69].mxu1 }
 0x32f   :  { %v1357_v10 = vmax.f32 %v1255_v46, %v1325_v47  ;;  %v2510_v12 = vadd.f32 %v2509_v11, %v2508_v8  ;;  %v2511_v58 = vpop.f32.mrb[70].mxu1 }
 0x330   :  { %v2512_v59 = vpop.f32.mrb[71].mxu1 }
 0x331   :  { %v1260_v7 = vadd.f32 %v2510_v12, %v3678_v60  ;;  %v2513_v13 = vadd.f32 %v2512_v59, %v2511_v58  ;;  %v1379_v49 = vpack.c.bf16 %v1357_v10, %v1356_v52 }
 0x333   :  { %v1326_v15 = vmul.f32 0.01, %v1260_v7  ;;  %v1263_v24 = vadd.f32 %v2513_v13, %v3680_v51  ;;  %2546 = vmatprep.subr.bf16.mxu0 %v1379_v49 }
 0x334   :  { %2547 = vmatpush3.bf16.msra.mxu0 %v3695_v61 }
 0x335   :  { %v1327_v4 = vmul.f32 0.01, %v1263_v24  ;;  %v2514_v37 = vpop.f32.mrb[72].mxu1  ;;  %v1358_v20 = vmax.f32 %v1260_v7, %v1326_v15 }
 0x336   :  { %v2515_v18 = vpop.f32.mrb[73].mxu1 }
 0x337   :  { %v1359_v2 = vmax.f32 %v1263_v24, %v1327_v4  ;;  %v2516_v21 = vadd.f32 %v2515_v18, %v2514_v37  ;;  %v2517_v32 = vpop.f32.mrb[74].mxu1 }
 0x338   :  { %v2518_v22 = vpop.f32.mrb[75].mxu1 }
 0x339   :  { %v1268_v35 = vadd.f32 %v2516_v21, %v3682_v3  ;;  %v2519_v23 = vadd.f32 %v2518_v22, %v2517_v32  ;;  %v1380_v60 = vpack.c.bf16 %v1359_v2, %v1358_v20 }
 0x33b   :  { %v1328_v45 = vmul.f32 0.01, %v1268_v35  ;;  %v1271_v16 = vadd.f32 %v2519_v23, %v3684_v36  ;;  %2548 = vmatprep.subr.bf16.mxu0 %v1380_v60  ;;  %v2906_v23 = vld [vmem:[%s3933_s1 + $0x200] ss:$8 sps:$4 sm:$0xff]   ;;  %v2915_v60 = vld [vmem:[%s3933_s1 + $0x234] ss:$8 sps:$4 sm:$0xff]  }
 0x33c   :  { %2549 = vmatpush3.bf16.msra.mxu0 %v3697_v48 }
 0x33d   :  { %v1329_v51 = vmul.f32 0.01, %v1271_v16  ;;  %v2520_v61 = vpop.f32.mrb[76].mxu1  ;;  %v1360_v26 = vmax.f32 %v1268_v35, %v1328_v45  ;;  %v2917_v45 = vld [vmem:[%s3933_s1 + $0x230] ss:$8 sps:$4 sm:$0xff]  }
 0x33e   :  { %v2521_v57 = vpop.f32.mrb[77].mxu1 }
 0x33f   :  { %v1361_v30 = vmax.f32 %v1271_v16, %v1329_v51  ;;  %v2522_v1 = vadd.f32 %v2521_v57, %v2520_v61  ;;  %v2523_v63 = vpop.f32.mrb[78].mxu1  ;;  %v2918_v16 = vld [vmem:[%s3933_s1 + $0x244] ss:$8 sps:$4 sm:$0xff]   ;;  %v2920_v51 = vld [vmem:[%s3933_s1 + $0x240] ss:$8 sps:$4 sm:$0xff]  }
 0x340   :  { %v2524_v25 = vpop.f32.mrb[79].mxu1  ;;  %v2921_v61 = vld [vmem:[%s3933_s1 + $0x254] ss:$8 sps:$4 sm:$0xff]   ;;  %v2923_v57 = vld [vmem:[%s3933_s1 + $0x250] ss:$8 sps:$4 sm:$0xff]  }
 0x341   :  { %v1276_v44 = vadd.f32 %v2522_v1, %v3691_v5  ;;  %v2525_v28 = vadd.f32 %v2524_v25, %v2523_v63  ;;  %v1381_v3 = vpack.c.bf16 %v1361_v30, %v1360_v26  ;;  %v2924_v26 = vld [vmem:[%s3933_s1 + $0x264] ss:$8 sps:$4 sm:$0xff]   ;;  %v2926_v30 = vld [vmem:[%s3933_s1 + $0x260] ss:$8 sps:$4 sm:$0xff]   ;;  %v2927_v1 = vld [vmem:[%s3933_s1 + $0x274] ss:$8 sps:$4 sm:$0xff]  }
 0x342   :  { %v2929_v63 = vld [vmem:[%s3933_s1 + $0x270] ss:$8 sps:$4 sm:$0xff]   ;;  %v2930_v25 = vld [vmem:[%s3933_s1 + $0x284] ss:$8 sps:$4 sm:$0xff]  }
 0x343   :  { %v1330_v6 = vmul.f32 0.01, %v1276_v44  ;;  %v1279_v29 = vadd.f32 %v2525_v28, %v3693_v27  ;;  %2550 = vmatprep.subr.bf16.mxu0 %v1381_v3  ;;  %v2933_v28 = vld [vmem:[%s3933_s1 + $0x294] ss:$8 sps:$4 sm:$0xff]   ;;  %v2935_v3 = vld [vmem:[%s3933_s1 + $0x290] ss:$8 sps:$4 sm:$0xff]  }
 0x344   :  { %2551 = vmatpush3.bf16.msra.mxu0 %v3703_v19 }
 0x345   :  { %v1331_v36 = vmul.f32 0.01, %v1279_v29  ;;  %v2526_v48 = vpop.f32.mrb[80].mxu1  ;;  %v1362_v14 = vmax.f32 %v1276_v44, %v1330_v6  ;;  %v2932_v44 = vld [vmem:[%s3933_s1 + $0x280] ss:$8 sps:$4 sm:$0xff]  }
 0x346   :  { %v2527_v33 = vpop.f32.mrb[81].mxu1  ;;  %v2936_v6 = vld [vmem:[%s3933_s1 + $0x2a4] ss:$8 sps:$4 sm:$0xff]  }
 0x347   :  { %v1363_v34 = vmax.f32 %v1279_v29, %v1331_v36  ;;  %v2528_v39 = vadd.f32 %v2527_v33, %v2526_v48  ;;  %v2529_v40 = vpop.f32.mrb[82].mxu1  ;;  %v2938_v29 = vld [vmem:[%s3933_s1 + $0x2a0] ss:$8 sps:$4 sm:$0xff]   ;;  %v2939_v36 = vld [vmem:[%s3933_s1 + $0x2b4] ss:$8 sps:$4 sm:$0xff]  }
 0x348   :  { %v2530_v42 = vpop.f32.mrb[83].mxu1  ;;  %v2941_v48 = vld [vmem:[%s3933_s1 + $0x2b0] ss:$8 sps:$4 sm:$0xff]   ;;  %v2942_v33 = vld [vmem:[%s3933_s1 + $0x2c4] ss:$8 sps:$4 sm:$0xff]  }
 0x349   :  { %v1284_v56 = vadd.f32 %v2528_v39, %v3699_v41  ;;  %v2531_v54 = vadd.f32 %v2530_v42, %v2529_v40  ;;  %v1382_v5 = vpack.c.bf16 %v1363_v34, %v1362_v14  ;;  %v2944_v14 = vld [vmem:[%s3933_s1 + $0x2c0] ss:$8 sps:$4 sm:$0xff]   ;;  %v2945_v34 = vld [vmem:[%s3933_s1 + $0x2d4] ss:$8 sps:$4 sm:$0xff]   ;;  %v2947_v39 = vld [vmem:[%s3933_s1 + $0x2d0] ss:$8 sps:$4 sm:$0xff]  }
 0x34a   :  { %v2948_v40 = vld [vmem:[%s3933_s1 + $0x2e4] ss:$8 sps:$4 sm:$0xff]   ;;  %v2950_v42 = vld [vmem:[%s3933_s1 + $0x2e0] ss:$8 sps:$4 sm:$0xff]  }
 0x34b   :  { %v1332_v9 = vmul.f32 0.01, %v1284_v56  ;;  %v1287_v46 = vadd.f32 %v2531_v54, %v3701_v55  ;;  %2552 = vmatprep.subr.bf16.mxu0 %v1382_v5  ;;  %v2953_v54 = vld [vmem:[%s3933_s1 + $0x2f0] ss:$8 sps:$4 sm:$0xff]   ;;  %v3838_v5 = vpop.permute.xlu0 %1534 }
 0x34c   :  { %2553 = vmatpush3.bf16.msra.mxu0 %v3709_v38 }
 0x34d   :  { %v1333_v27 = vmul.f32 0.01, %v1287_v46  ;;  %v2532_v19 = vpop.f32.mrb[84].mxu1  ;;  %v1364_v8 = vmax.f32 %v1284_v56, %v1332_v9  ;;  %v2951_v56 = vld [vmem:[%s3933_s1 + $0x2f4] ss:$8 sps:$4 sm:$0xff]   ;;  %v3840_v9 = vpop.permute.xlu1 %1539 }
 0x34e   :  { %v2533_v47 = vpop.f32.mrb[85].mxu1 }
 0x34f   :  { %v1365_v11 = vmax.f32 %v1287_v46, %v1333_v27  ;;  %v2534_v52 = vadd.f32 %v2533_v47, %v2532_v19  ;;  %v2535_v10 = vpop.f32.mrb[86].mxu1  ;;  %v1455_v46 = vpop.permute.xlu0 %1454 }
 0x350   :  { %v2536_v12 = vpop.f32.mrb[87].mxu1 }
 0x351   :  { %v1292_v58 = vadd.f32 %v2534_v52, %v3705_v31  ;;  %v2537_v59 = vadd.f32 %v2536_v12, %v2535_v10  ;;  %v1383_v41 = vpack.c.bf16 %v1365_v11, %v1364_v8  ;;  %v1460_v27 = vpop.permute.xlu1 %1459 }
 0x353   :  { %v1334_v7 = vmul.f32 0.01, %v1292_v58  ;;  %v1295_v13 = vadd.f32 %v2537_v59, %v3707_v53  ;;  %2554 = vmatprep.subr.bf16.mxu0 %v1383_v41  ;;  %v3842_v19 = vpop.permute.xlu0 %1544 }
 0x354   :  { %2555 = vmatpush3.bf16.msra.mxu0 %v3711_v43 }
 0x355   :  { %v1335_v55 = vmul.f32 0.01, %v1295_v13  ;;  %v2538_v38 = vpop.f32.mrb[88].mxu1  ;;  %v1366_v15 = vmax.f32 %v1292_v58, %v1334_v7  ;;  %v3844_v47 = vpop.permute.xlu1 %1549 }
 0x356   :  { %v2539_v49 = vpop.f32.mrb[89].mxu1 }
 0x357   :  { %v1367_v24 = vmax.f32 %v1295_v13, %v1335_v55  ;;  %v2540_v4 = vadd.f32 %v2539_v49, %v2538_v38  ;;  %v2541_v37 = vpop.f32.mrb[90].mxu1  ;;  %v1465_v8 = vpop.permute.xlu0 %1464  ;;  %v2959_v55 = vmov 1966171168   ;;  %v2028_v49 = vlaneseq }
 0x358   :  { %v2542_v18 = vpop.f32.mrb[91].mxu1  ;;  %v2026_v38 = vunpack.c.l.s4 %v2959_v55 }
 0x359   :  { %v1300_v20 = vadd.f32 %v2540_v4, %v3713_v0  ;;  %v2543_v2 = vadd.f32 %v2542_v18, %v2541_v37  ;;  %v1384_v31 = vpack.c.bf16 %v1367_v24, %v1366_v15  ;;  %v2909_v0 = vld [vmem:[%s3933_s1 + $0x214] ss:$8 sps:$4 sm:$0xff]   ;;  %v1470_v11 = vpop.permute.xlu1 %1469  ;;  %v2029_v18 = vshrl.u32 %v2028_v49, 7 }
 0x35a   :  { %v2027_v37 = vunpack.c.0.s8 %v2026_v38 }
 0x35b   :  { %v1336_v21 = vmul.f32 0.01, %v1300_v20  ;;  %v1303_v32 = vadd.f32 %v2543_v2, %v3715_v50  ;;  %2556 = vmatprep.subr.bf16.mxu0 %v1384_v31  ;;  %v2911_v50 = vld [vmem:[%s3933_s1 + $0x210] ss:$8 sps:$4 sm:$0xff]   ;;  %v3846_v52 = vpop.permute.xlu0 %1554 }
 0x35c   :  { %2557 = vmatpush3.bf16.msra.mxu0 %v3717_v17  ;;  %v2912_v17 = vld [vmem:[%s3933_s1 + $0x224] ss:$8 sps:$4 sm:$0xff]   ;;  %v3855_v2 = vld.sshfl [vmem:[%s3934_s3] sm:$0x11 pattern:$0x75316420] }
 0x35d   :  { %v1337_v53 = vmul.f32 0.01, %v1303_v32  ;;  %v1368_v43 = vmax.f32 %v1300_v20, %v1336_v21  ;;  %v3848_v10 = vpop.permute.xlu1 %1559 }
 0x35f   :  { %v1369_v22 = vmax.f32 %v1303_v32, %v1337_v53  ;;  %v1475_v12 = vpop.permute.xlu0 %1474  ;;  %v2024_v32 = vcombine.high %v3855_v2, %v3855_v2  ;;  %v3859_v53 = vsub.s32 %v2027_v37, %v2029_v18 }
 0x361   :  { %v1385_v35 = vpack.c.bf16 %v1369_v22, %v1368_v43  ;;  %v1480_v59 = vpop.permute.xlu1 %1479 }
 0x363   :  { %2558 = vmatprep.subr.bf16.mxu0 %v1385_v35  ;;  %v3850_v20 = vpop.permute.xlu0 %1564 }
 0x364   :  { %2559 = vmatpush3.bf16.msra.mxu0 %v3719_v62  ;;  %v2914_v62 = vld [vmem:[%s3933_s1 + $0x220] ss:$8 sps:$4 sm:$0xff]  }
 0x365   :  { %v3861_v43 = vpop.permute.xlu1 %1569 }
 0x367   :  { %1805 = vmatmul.mubr.bf16.vlgmr.msra.gmra.mrb[36].mxu0 %v2906_v23  ;;  %v2031_v23 = vrot.slane %v3855_v2, %v3859_v53 }
 0x368   :  { %1812 = vmatprep.mubr.bf16.mxu0 %v2909_v0  ;;  %v2038_v0 = vrot.slane %v2024_v32, %v3859_v53 }
 0x36a   :  { %2073 = vmatprep.mubr.bf16.mxu1 %v2038_v0 }
 0x36f   :  { %1813 = vmatmul.mubr.bf16.gmra.mrb[40].mxu0 %v2911_v50 }
 0x370   :  { %1820 = vmatprep.mubr.bf16.mxu0 %v2912_v17 }
 0x377   :  { %1821 = vmatmul.mubr.bf16.gmra.mrb[44].mxu0 %v2914_v62 }
 0x378   :  { %1828 = vmatprep.mubr.bf16.mxu0 %v2915_v60 }
 0x37f   :  { %1829 = vmatmul.mubr.bf16.gmra.mrb[48].mxu0 %v2917_v45 }
 0x380   :  { %1836 = vmatprep.mubr.bf16.mxu0 %v2918_v16  ;;  %v1485_v16 = vpop.permute.xlu0 %1484 }
 0x387   :  { %1837 = vmatmul.mubr.bf16.gmra.mrb[52].mxu0 %v2920_v51 }
 0x388   :  { %1844 = vmatprep.mubr.bf16.mxu0 %v2921_v61 }
 0x38f   :  { %1845 = vmatmul.mubr.bf16.gmra.mrb[56].mxu0 %v2923_v57 }
 0x390   :  { %1852 = vmatprep.mubr.bf16.mxu0 %v2924_v26 }
 0x397   :  { %1853 = vmatmul.mubr.bf16.gmra.mrb[60].mxu0 %v2926_v30  ;;  %v1490_v30 = vpop.permute.xlu1 %1489 }
 0x398   :  { %1860 = vmatprep.mubr.bf16.mxu0 %v2927_v1 }
 0x39f   :  { %1861 = vmatmul.mubr.bf16.gmra.mrb[64].mxu0 %v2929_v63 }
 0x3a0   :  { %1868 = vmatprep.mubr.bf16.mxu0 %v2930_v25 }
 0x3a7   :  { %1869 = vmatmul.mubr.bf16.gmra.mrb[68].mxu0 %v2932_v44 }
 0x3a8   :  { %1876 = vmatprep.mubr.bf16.mxu0 %v2933_v28  ;;  %v3868_v28 = vpop.permute.xlu0 %1574 }
 0x3af   :  { %1877 = vmatmul.mubr.bf16.gmra.mrb[72].mxu0 %v2935_v3 }
 0x3b0   :  { %1884 = vmatprep.mubr.bf16.mxu0 %v2936_v6 }
 0x3b7   :  { %1885 = vmatmul.mubr.bf16.gmra.mrb[76].mxu0 %v2938_v29 }
 0x3b8   :  { %1892 = vmatprep.mubr.bf16.mxu0 %v2939_v36 }
 0x3bf   :  { %1893 = vmatmul.mubr.bf16.gmra.mrb[80].mxu0 %v2941_v48 }
 0x3c0   :  { %1900 = vmatprep.mubr.bf16.mxu0 %v2942_v33  ;;  %v3870_v33 = vpop.permute.xlu1 %1579 }
 0x3c7   :  { %1901 = vmatmul.mubr.bf16.gmra.mrb[84].mxu0 %v2944_v14 }
 0x3c8   :  { %1908 = vmatprep.mubr.bf16.mxu0 %v2945_v34 }
 0x3cf   :  { %1909 = vmatmul.mubr.bf16.gmra.mrb[88].mxu0 %v2947_v39 }
 0x3d0   :  { %1916 = vmatprep.mubr.bf16.mxu0 %v2948_v40 }
 0x3d7   :  { %1917 = vmatmul.mubr.bf16.gmra.mrb[92].mxu0 %v2950_v42 }
 0x3d8   :  { %1924 = vmatprep.mubr.bf16.mxu0 %v2951_v56 }
 0x3df   :  { %1925 = vmatmul.mubr.bf16.gmra.mrb[96].mxu0 %v2953_v54  ;;  %v1495_v54 = vpop.permute.xlu0 %1494 }
 0x43a   :  { %v2560_v58 = vpop.f32.mrb[36].mxu0 }
 0x43b   :  { %v2561_v41 = vpop.f32.mrb[37].mxu0 }
 0x43c   :  { %v2562_v7 = vadd.f32 %v2561_v41, %v2560_v58  ;;  %v2563_v13 = vpop.f32.mrb[38].mxu0 }
 0x43d   :  { %v2564_v15 = vpop.f32.mrb[39].mxu0 }
 0x43e   :  { %v1807_v24 = vadd.f32 %v2562_v7, %v1455_v46  ;;  %v2565_v4 = vadd.f32 %v2564_v15, %v2563_v13 }
 0x440   :  { %v1933_v31 = vmul.f32 0.01, %v1807_v24  ;;  %v1810_v21 = vadd.f32 %v2565_v4, %v1460_v27 }
 0x442   :  { %v1934_v22 = vmul.f32 0.01, %v1810_v21  ;;  %v2566_v35 = vpop.f32.mrb[40].mxu0  ;;  %v1965_v17 = vmax.f32 %v1807_v24, %v1933_v31  ;;  %v3876_v24 = vpop.permute.xlu0 %1584 }
 0x443   :  { %v2567_v50 = vpop.f32.mrb[41].mxu0 }
 0x444   :  { %v1966_v62 = vmax.f32 %v1810_v21, %v1934_v22  ;;  %v2568_v60 = vadd.f32 %v2567_v50, %v2566_v35  ;;  %v2569_v45 = vpop.f32.mrb[42].mxu0 }
 0x445   :  { %v2570_v51 = vpop.f32.mrb[43].mxu0 }
 0x446   :  { %v3866_v61 = vpack.c.bf16 %v1966_v62, %v1965_v17  ;;  %v1815_v57 = vadd.f32 %v2568_v60, %v1465_v8  ;;  %v2571_v26 = vadd.f32 %v2570_v51, %v2569_v45  ;;  %v1500_v8 = vpop.permute.xlu1 %1499  ;;  %v1505_v0 = vpop.permute.xlu0 %1504 }
 0x448   :  { %v1935_v1 = vmul.f32 0.01, %v1815_v57  ;;  %v1818_v63 = vadd.f32 %v2571_v26, %v1470_v11 }
 0x44a   :  { %v1936_v25 = vmul.f32 0.01, %v1818_v63  ;;  %v2572_v44 = vpop.f32.mrb[44].mxu0  ;;  %v1967_v6 = vmax.f32 %v1815_v57, %v1935_v1  ;;  %v3878_v37 = vpop.permute.xlu1 %1589 }
 0x44b   :  { %v2573_v3 = vpop.f32.mrb[45].mxu0 }
 0x44c   :  { %v1968_v29 = vmax.f32 %v1818_v63, %v1936_v25  ;;  %v2574_v36 = vadd.f32 %v2573_v3, %v2572_v44  ;;  %v2575_v48 = vpop.f32.mrb[46].mxu0 }
 0x44d   :  { %v2576_v14 = vpop.f32.mrb[47].mxu0 }
 0x44e   :  { %v3872_v34 = vpack.c.bf16 %v1968_v29, %v1967_v6  ;;  %v1823_v39 = vadd.f32 %v2574_v36, %v1475_v12  ;;  %v2577_v40 = vadd.f32 %v2576_v14, %v2575_v48  ;;  %v1510_v45 = vpop.permute.xlu1 %1509 }
 0x450   :  { %v1937_v42 = vmul.f32 0.01, %v1823_v39  ;;  %v1826_v56 = vadd.f32 %v2577_v40, %v1480_v59 }
 0x452   :  { %v1938_v46 = vmul.f32 0.01, %v1826_v56  ;;  %v2578_v27 = vpop.f32.mrb[48].mxu0  ;;  %v1969_v58 = vmax.f32 %v1823_v39, %v1937_v42  ;;  %v3884_v6 = vpop.permute.xlu1 %1599 }
 0x453   :  { %v2579_v11 = vpop.f32.mrb[49].mxu0 }
 0x454   :  { %v1970_v41 = vmax.f32 %v1826_v56, %v1938_v46  ;;  %v2580_v7 = vadd.f32 %v2579_v11, %v2578_v27  ;;  %v2581_v13 = vpop.f32.mrb[50].mxu0 }
 0x455   :  { %v2582_v55 = vpop.f32.mrb[51].mxu0 }
 0x456   :  { %v3874_v38 = vpack.c.bf16 %v1970_v41, %v1969_v58  ;;  %v1831_v49 = vadd.f32 %v2580_v7, %v1485_v16  ;;  %v2583_v15 = vadd.f32 %v2582_v55, %v2581_v13  ;;  %v1520_v46 = vpop.permute.xlu1 %1519 }
 0x458   :  { %v1939_v12 = vmul.f32 0.01, %v1831_v49  ;;  %v1834_v4 = vadd.f32 %v2583_v15, %v1490_v30  ;;  %v3882_v30 = vpop.permute.xlu0 %1594 }
 0x45a   :  { %v1940_v59 = vmul.f32 0.01, %v1834_v4  ;;  %v2584_v18 = vpop.f32.mrb[52].mxu0  ;;  %v1971_v21 = vmax.f32 %v1831_v49, %v1939_v12 }
 0x45b   :  { %v2585_v31 = vpop.f32.mrb[53].mxu0 }
 0x45c   :  { %v1972_v32 = vmax.f32 %v1834_v4, %v1940_v59  ;;  %v2586_v22 = vadd.f32 %v2585_v31, %v2584_v18  ;;  %v2587_v35 = vpop.f32.mrb[54].mxu0  ;;  %v1515_v42 = vpop.permute.xlu0 %1514 }
 0x45d   :  { %v2588_v50 = vpop.f32.mrb[55].mxu0  ;;  %v3892_v59 = vpop.permute.xlu1 %1609 }
 0x45e   :  { %v3880_v17 = vpack.c.bf16 %v1972_v32, %v1971_v21  ;;  %v1839_v62 = vadd.f32 %v2586_v22, %v1495_v54  ;;  %v2589_v60 = vadd.f32 %v2588_v50, %v2587_v35 }
 0x460   :  { %v1941_v16 = vmul.f32 0.01, %v1839_v62  ;;  %v1842_v51 = vadd.f32 %v2589_v60, %v1500_v8  ;;  %v3890_v15 = vpop.permute.xlu0 %1604 }
 0x462   :  { %v1942_v57 = vmul.f32 0.01, %v1842_v51  ;;  %v2590_v26 = vpop.f32.mrb[56].mxu0  ;;  %v1973_v63 = vmax.f32 %v1839_v62, %v1941_v16 }
 0x463   :  { %v2591_v1 = vpop.f32.mrb[57].mxu0 }
 0x464   :  { %v1974_v25 = vmax.f32 %v1842_v51, %v1942_v57  ;;  %v2592_v44 = vadd.f32 %v2591_v1, %v2590_v26  ;;  %v2593_v3 = vpop.f32.mrb[58].mxu0  ;;  %v1525_v50 = vpop.permute.xlu0 %1524 }
 0x465   :  { %v2594_v29 = vpop.f32.mrb[59].mxu0  ;;  %v1530_v51 = vpop.permute.xlu1 %1529 }
 0x466   :  { %v3886_v36 = vpack.c.bf16 %v1974_v25, %v1973_v63  ;;  %v1847_v48 = vadd.f32 %v2592_v44, %v1505_v0  ;;  %v2595_v14 = vadd.f32 %v2594_v29, %v2593_v3 }
 0x468   :  { %v1943_v39 = vmul.f32 0.01, %v1847_v48  ;;  %v1850_v40 = vadd.f32 %v2595_v14, %v1510_v45 }
 0x46a   :  { %v1944_v56 = vmul.f32 0.01, %v1850_v40  ;;  %v2596_v54 = vpop.f32.mrb[60].mxu0  ;;  %v1975_v8 = vmax.f32 %v1847_v48, %v1943_v39 }
 0x46b   :  { %v2597_v27 = vpop.f32.mrb[61].mxu0 }
 0x46c   :  { %v1976_v11 = vmax.f32 %v1850_v40, %v1944_v56  ;;  %v2598_v58 = vadd.f32 %v2597_v27, %v2596_v54  ;;  %v2599_v41 = vpop.f32.mrb[62].mxu0 }
 0x46d   :  { %v2600_v7 = vpop.f32.mrb[63].mxu0 }
 0x46e   :  { %v3888_v13 = vpack.c.bf16 %v1976_v11, %v1975_v8  ;;  %v1855_v55 = vadd.f32 %v2598_v58, %v1515_v42  ;;  %v2601_v49 = vadd.f32 %v2600_v7, %v2599_v41 }
 0x470   :  { %v1945_v12 = vmul.f32 0.01, %v1855_v55  ;;  %v1858_v4 = vadd.f32 %v2601_v49, %v1520_v46 }
 0x472   :  { %v1946_v18 = vmul.f32 0.01, %v1858_v4  ;;  %v2602_v31 = vpop.f32.mrb[64].mxu0  ;;  %v1977_v32 = vmax.f32 %v1855_v55, %v1945_v12 }
 0x473   :  { %v2603_v21 = vpop.f32.mrb[65].mxu0 }
 0x474   :  { %v1978_v22 = vmax.f32 %v1858_v4, %v1946_v18  ;;  %v2604_v35 = vadd.f32 %v2603_v21, %v2602_v31  ;;  %v2605_v0 = vpop.f32.mrb[66].mxu0 }
 0x475   :  { %v2606_v62 = vpop.f32.mrb[67].mxu0 }
 0x476   :  { %v3894_v60 = vpack.c.bf16 %v1978_v22, %v1977_v32  ;;  %v1863_v45 = vadd.f32 %v2604_v35, %v1525_v50  ;;  %v2607_v16 = vadd.f32 %v2606_v62, %v2605_v0 }
 0x478   :  { %v1947_v57 = vmul.f32 0.01, %v1863_v45  ;;  %v1866_v26 = vadd.f32 %v2607_v16, %v1530_v51 }
 0x47a   :  { %v1948_v1 = vmul.f32 0.01, %v1866_v26  ;;  %v2608_v63 = vpop.f32.mrb[68].mxu0  ;;  %v1979_v44 = vmax.f32 %v1863_v45, %v1947_v57 }
 0x47b   :  { %v2609_v25 = vpop.f32.mrb[69].mxu0 }
 0x47c   :  { %v1980_v3 = vmax.f32 %v1866_v26, %v1948_v1  ;;  %v2610_v29 = vadd.f32 %v2609_v25, %v2608_v63  ;;  %v2611_v48 = vpop.f32.mrb[70].mxu0 }
 0x47d   :  { %v2612_v14 = vpop.f32.mrb[71].mxu0 }
 0x47e   :  { %v3896_v39 = vpack.c.bf16 %v1980_v3, %v1979_v44  ;;  %v1871_v40 = vadd.f32 %v2610_v29, %v3838_v5  ;;  %v2613_v42 = vadd.f32 %v2612_v14, %v2611_v48 }
 0x480   :  { %v1949_v56 = vmul.f32 0.01, %v1871_v40  ;;  %v1874_v54 = vadd.f32 %v2613_v42, %v3840_v9 }
 0x482   :  { %v1950_v46 = vmul.f32 0.01, %v1874_v54  ;;  %v2614_v27 = vpop.f32.mrb[72].mxu0  ;;  %v1981_v11 = vmax.f32 %v1871_v40, %v1949_v56 }
 0x483   :  { %v2615_v8 = vpop.f32.mrb[73].mxu0 }
 0x484   :  { %v1982_v58 = vmax.f32 %v1874_v54, %v1950_v46  ;;  %v2616_v41 = vadd.f32 %v2615_v8, %v2614_v27  ;;  %v2617_v7 = vpop.f32.mrb[74].mxu0 }
 0x485   :  { %v2618_v55 = vpop.f32.mrb[75].mxu0 }
 0x486   :  { %v1879_v49 = vadd.f32 %v2616_v41, %v3842_v19  ;;  %v2619_v12 = vadd.f32 %v2618_v55, %v2617_v7  ;;  %v2005_v4 = vpack.c.bf16 %v1982_v58, %v1981_v11 }
 0x488   :  { %v1951_v18 = vmul.f32 0.01, %v1879_v49  ;;  %v1882_v31 = vadd.f32 %v2619_v12, %v3844_v47  ;;  %2656 = vmatprep.subr.bf16.mxu1 %v2005_v4 }
 0x489   :  { %2657 = vmatpush3.bf16.msra.mxu1 %v3866_v61 }
 0x48a   :  { %v1952_v5 = vmul.f32 0.01, %v1882_v31  ;;  %v2620_v9 = vpop.f32.mrb[76].mxu0  ;;  %v1983_v32 = vmax.f32 %v1879_v49, %v1951_v18 }
 0x48b   :  { %v2621_v21 = vpop.f32.mrb[77].mxu0 }
 0x48c   :  { %v1984_v22 = vmax.f32 %v1882_v31, %v1952_v5  ;;  %v2622_v35 = vadd.f32 %v2621_v21, %v2620_v9  ;;  %v2623_v0 = vpop.f32.mrb[78].mxu0 }
 0x48d   :  { %v2624_v50 = vpop.f32.mrb[79].mxu0 }
 0x48e   :  { %v1887_v62 = vadd.f32 %v2622_v35, %v3846_v52  ;;  %v2625_v45 = vadd.f32 %v2624_v50, %v2623_v0  ;;  %v2006_v19 = vpack.c.bf16 %v1984_v22, %v1983_v32 }
 0x490   :  { %v1953_v16 = vmul.f32 0.01, %v1887_v62  ;;  %v1890_v51 = vadd.f32 %v2625_v45, %v3848_v10  ;;  %2658 = vmatprep.subr.bf16.mxu1 %v2006_v19 }
 0x491   :  { %2659 = vmatpush3.bf16.msra.mxu1 %v3872_v34 }
 0x492   :  { %v1954_v47 = vmul.f32 0.01, %v1890_v51  ;;  %v2626_v61 = vpop.f32.mrb[80].mxu0  ;;  %v1985_v26 = vmax.f32 %v1887_v62, %v1953_v16 }
 0x493   :  { %v2627_v57 = vpop.f32.mrb[81].mxu0 }
 0x494   :  { %v1986_v1 = vmax.f32 %v1890_v51, %v1954_v47  ;;  %v2628_v63 = vadd.f32 %v2627_v57, %v2626_v61  ;;  %v2629_v25 = vpop.f32.mrb[82].mxu0 }
 0x495   :  { %v2630_v44 = vpop.f32.mrb[83].mxu0 }
 0x496   :  { %v1895_v3 = vadd.f32 %v2628_v63, %v3850_v20  ;;  %v2631_v29 = vadd.f32 %v2630_v44, %v2629_v25  ;;  %v2007_v52 = vpack.c.bf16 %v1986_v1, %v1985_v26 }
 0x498   :  { %v1955_v48 = vmul.f32 0.01, %v1895_v3  ;;  %v1898_v14 = vadd.f32 %v2631_v29, %v3861_v43  ;;  %2660 = vmatprep.subr.bf16.mxu1 %v2007_v52 }
 0x499   :  { %2661 = vmatpush3.bf16.msra.mxu1 %v3874_v38 }
 0x49a   :  { %v1956_v10 = vmul.f32 0.01, %v1898_v14  ;;  %v2632_v34 = vpop.f32.mrb[84].mxu0  ;;  %v1987_v42 = vmax.f32 %v1895_v3, %v1955_v48 }
 0x49b   :  { %v2633_v40 = vpop.f32.mrb[85].mxu0 }
 0x49c   :  { %v1988_v56 = vmax.f32 %v1898_v14, %v1956_v10  ;;  %v2634_v54 = vadd.f32 %v2633_v40, %v2632_v34  ;;  %v2635_v46 = vpop.f32.mrb[86].mxu0  ;;  %v2015_v14 = vstv %s3935_s4 }
 0x49d   :  { %v2636_v27 = vpop.f32.mrb[87].mxu0 }
 0x49e   :  { %v1903_v8 = vadd.f32 %v2634_v54, %v3868_v28  ;;  %v2637_v11 = vadd.f32 %v2636_v27, %v2635_v46  ;;  %v2008_v20 = vpack.c.bf16 %v1988_v56, %v1987_v42 }
 0x4a0   :  { %v1957_v58 = vmul.f32 0.01, %v1903_v8  ;;  %v1906_v41 = vadd.f32 %v2637_v11, %v3870_v33  ;;  %2662 = vmatprep.subr.bf16.mxu1 %v2008_v20 }
 0x4a1   :  { %2663 = vmatpush3.bf16.msra.mxu1 %v3880_v17 }
 0x4a2   :  { %v1958_v43 = vmul.f32 0.01, %v1906_v41  ;;  %v2638_v38 = vpop.f32.mrb[88].mxu0  ;;  %v1989_v55 = vmax.f32 %v1903_v8, %v1957_v58 }
 0x4a3   :  { %v2639_v7 = vpop.f32.mrb[89].mxu0 }
 0x4a4   :  { %v1990_v49 = vmax.f32 %v1906_v41, %v1958_v43  ;;  %v2640_v12 = vadd.f32 %v2639_v7, %v2638_v38  ;;  %v2641_v4 = vpop.f32.mrb[90].mxu0 }
 0x4a5   :  { %v2642_v18 = vpop.f32.mrb[91].mxu0 }
 0x4a6   :  { %v1911_v31 = vadd.f32 %v2640_v12, %v3876_v24  ;;  %v2643_v5 = vadd.f32 %v2642_v18, %v2641_v4  ;;  %v2009_v28 = vpack.c.bf16 %v1990_v49, %v1989_v55 }
 0x4a8   :  { %v1959_v9 = vmul.f32 0.01, %v1911_v31  ;;  %v1914_v21 = vadd.f32 %v2643_v5, %v3878_v37  ;;  %2664 = vmatprep.subr.bf16.mxu1 %v2009_v28 }
 0x4a9   :  { %2665 = vmatpush3.bf16.msra.mxu1 %v3886_v36 }
 0x4aa   :  { %v1960_v33 = vmul.f32 0.01, %v1914_v21  ;;  %v2644_v17 = vpop.f32.mrb[92].mxu0  ;;  %v1991_v22 = vmax.f32 %v1911_v31, %v1959_v9 }
 0x4ab   :  { %v2645_v32 = vpop.f32.mrb[93].mxu0 }
 0x4ac   :  { %v1992_v35 = vmax.f32 %v1914_v21, %v1960_v33  ;;  %v2646_v0 = vadd.f32 %v2645_v32, %v2644_v17  ;;  %v2647_v50 = vpop.f32.mrb[94].mxu0 }
 0x4ad   :  { %v2648_v62 = vpop.f32.mrb[95].mxu0 }
 0x4ae   :  { %v1919_v45 = vadd.f32 %v2646_v0, %v3882_v30  ;;  %v2649_v19 = vadd.f32 %v2648_v62, %v2647_v50  ;;  %v2010_v24 = vpack.c.bf16 %v1992_v35, %v1991_v22 }
 0x4b0   :  { %v1961_v16 = vmul.f32 0.01, %v1919_v45  ;;  %v1922_v51 = vadd.f32 %v2649_v19, %v3884_v6  ;;  %2666 = vmatprep.subr.bf16.mxu1 %v2010_v24 }
 0x4b1   :  { %2667 = vmatpush3.bf16.msra.mxu1 %v3888_v13 }
 0x4b2   :  { %v1962_v37 = vmul.f32 0.01, %v1922_v51  ;;  %v2650_v36 = vpop.f32.mrb[96].mxu0  ;;  %v1993_v61 = vmax.f32 %v1919_v45, %v1961_v16 }
 0x4b3   :  { %v2651_v47 = vpop.f32.mrb[97].mxu0 }
 0x4b4   :  { %v1994_v57 = vmax.f32 %v1922_v51, %v1962_v37  ;;  %v2652_v26 = vadd.f32 %v2651_v47, %v2650_v36  ;;  %v2653_v1 = vpop.f32.mrb[98].mxu0 }
 0x4b5   :  { %v2654_v63 = vpop.f32.mrb[99].mxu0 }
 0x4b6   :  { %v1927_v25 = vadd.f32 %v2652_v26, %v3890_v15  ;;  %v2655_v44 = vadd.f32 %v2654_v63, %v2653_v1  ;;  %v2011_v30 = vpack.c.bf16 %v1994_v57, %v1993_v61 }
 0x4b8   :  { %v1963_v3 = vmul.f32 0.01, %v1927_v25  ;;  %v1930_v29 = vadd.f32 %v2655_v44, %v3892_v59  ;;  %2668 = vmatprep.subr.bf16.mxu1 %v2011_v30 }
 0x4b9   :  { %2669 = vmatpush3.bf16.msra.mxu1 %v3894_v60 }
 0x4ba   :  { %v1964_v6 = vmul.f32 0.01, %v1930_v29  ;;  %v1995_v13 = vmax.f32 %v1927_v25, %v1963_v3 }
 0x4bc   :  { %v1996_v52 = vmax.f32 %v1930_v29, %v1964_v6 }
 0x4be   :  { %v2012_v48 = vpack.c.bf16 %v1996_v52, %v1995_v13 }
 0x4c0   :  { %2670 = vmatprep.subr.bf16.mxu1 %v2012_v48 }
 0x4c1   :  { %2671 = vmatpush3.bf16.msra.mxu1 %v3896_v39 }
 0x4c4   :  { %2074 = vmatmul.mubr.bf16.vlgmr.msra.gmra.mrb[92].mxu1 %v2031_v23 }
 0x597   :  { %v2672_v15 = vpop.f32.mrb[92].mxu1 }
 0x598   :  { %v2673_v59 = vpop.f32.mrb[93].mxu1 }
 0x599   :  { %v2674_v10 = vadd.f32 %v2673_v59, %v2672_v15  ;;  %v2675_v34 = vpop.f32.mrb[94].mxu1 }
 0x59a   :  { %v2676_v60 = vpop.f32.mrb[95].mxu1 }
 0x59b   :  { %v2076_v40 = vadd.f32 %v2674_v10, %v2015_v14 }
 0x59d   :  { %v2081_v42 = vmul.f32 0.01, %v2076_v40 }
 0x59f   :  { %v2082_v56 = vmax.f32 %v2076_v40, %v2081_v42 }
 0x5a1   :  { %v2319_v54 = vmul.f32 -1.442695, %v2082_v56 }
 0x5a3   :  { %2954 = vpow2.f32 %v2319_v54 }
 0x5ad   :  { %v2955_v46 = vpop.eup %2954 }
 0x5ae   :  { %v2086_v39 = vadd.f32 1.0, %v2955_v46 }
 0x5b0   :  { %2956 = vrcp.f32 %v2086_v39 }
 0x5ba   :  { %v2957_v27 = vpop.eup %2956 }
 0x5bb   :  { %2089 = vst [vmem:[%s3936_s5] sm:$0x1] %v2957_v27 }

</bundles_post_ra>
